<compile_context>
chip_gen: v7x
topology: tpu7x:2x2x1
jax: 0.10.0
libtpu: 0.0.40
codegen_flags: <defaults>
</compile_context>

<pallas_src>
import functools
import math

import jax
import jax.numpy as jnp
from jax.experimental import pallas as pl
from jax.experimental.pallas import tpu as pltpu

_MASK = -1e30  # large finite negative for masked (padded) key columns


def _cdiv(a, b):
    return -(-a // b)


def _round_up(x, m):
    return _cdiv(x, m) * m


# --------------------------- K|V projection kernel ---------------------------

def _kv_proj_kernel(xkv_ref, wkv_ref, bkv_ref, kv_ref):
    # One fused [dk, 2*H_pad] matmul per key tile; runs ONCE over the keys.
    kv = jnp.dot(xkv_ref[...].astype(jnp.bfloat16), wkv_ref[...],
                 preferred_element_type=jnp.float32) + bkv_ref[...]
    kv_ref[...] = kv.astype(kv_ref.dtype)


# ------------------------- flash cross-attention kernel ----------------------

def _raa_flash_kernel(
    xq_ref, wq_ref, bq_ref, kv_ref, gamma_ref, beta_ref,
    y_ref,
    q_sc, m_sc, l_sc, acc_sc,
    *, scale, eps, h_pad, inv_h, nk_real, tile_k, needs_k_mask,
):
    kt = pl.program_id(1)

    # ---- per-query-tile prologue: project Q once (bf16), reset stats ------
    @pl.when(kt == 0)
    def _():
        q = jnp.dot(xq_ref[...].astype(jnp.bfloat16), wq_ref[...],
                    preferred_element_type=jnp.float32)
        q_sc[...] = ((q + bq_ref[...]) * scale).astype(q_sc.dtype)  # bf16
        m_sc[...] = jnp.full_like(m_sc, -jnp.inf)
        l_sc[...] = jnp.zeros_like(l_sc)
        acc_sc[...] = jnp.zeros_like(acc_sc)

    # ---- precomputed K|V tile (bf16, lane-aligned slice at h_pad) ----------
    kv = kv_ref[...]
    k = kv[:, :h_pad]
    v = kv[:, h_pad:]

    # ---- scores: contract last axes directly (no transpose through XLU) ----
    s = jax.lax.dot_general(
        q_sc[...], k,
        dimension_numbers=(((1,), (1,)), ((), ())),
        preferred_element_type=jnp.float32)            # [tile_q, tile_k]

    if needs_k_mask:  # compiled only when nk % tile_k != 0
        # (1, tile_k) iota + broadcast select; non-last tiles are always valid
        # so the predicate is exact without an extra kt check.
        key_idx = kt * tile_k + jax.lax.broadcasted_iota(jnp.int32, (1, tile_k), 1)
        s = jnp.where(key_idx < nk_real, s, _MASK)

    # ---- online softmax accumulation (f32 exp: portable to v5e) ------------
    m_new = jnp.maximum(m_sc[...], jnp.max(s, axis=-1, keepdims=True))
    alpha = jnp.exp(m_sc[...] - m_new)
    p = jnp.exp(s - m_new)
    l_sc[...] = alpha * l_sc[...] + jnp.sum(p, axis=-1, keepdims=True)
    acc_sc[...] = alpha * acc_sc[...] + jnp.dot(
        p.astype(jnp.bfloat16), v, preferred_element_type=jnp.float32)
    m_sc[...] = m_new

    # ---- epilogue: 1/denom once, dropout(eval)=identity, fused LayerNorm ----
    @pl.when(kt == pl.num_programs(1) - 1)
    def _():
        o = acc_sc[...] * pl.reciprocal(l_sc[...], approx=True)
        # Padded hidden columns of o are exactly 0, so sum-based statistics
        # over the REAL hidden width are exact.
        mu = jnp.sum(o, axis=-1, keepdims=True) * inv_h
        var = jnp.sum(o * o, axis=-1, keepdims=True) * inv_h - mu * mu
        inv = jax.lax.rsqrt(var + eps)
        y_ref[...] = ((o - mu) * inv * gamma_ref[...] + beta_ref[...]).astype(y_ref.dtype)


# ------------------------------ host-side wrapper ------------------------------

def raa_attention_block(x_q, x_kv, attn_params, ln_params, hidden_dim,
                        *, max_tile_q=512, max_tile_k=1024,
                        out_dtype=jnp.float32):
    """One RelationAwareAttention branch + dropout(eval) + shared LayerNorm.

    Default tiles target v5e/v6e (128 MiB VMEM); on v7x (64 MiB) pass smaller
    max_tile_q/max_tile_k — the explicit vmem_limit below is capped at 48 MiB.
    """
    nq, dq = x_q.shape
    nk, dk = x_kv.shape
    wq, bq = attn_params["wq"], attn_params["bq"]
    wk, bk = attn_params["wk"], attn_params["bk"]
    wv, bv = attn_params["wv"], attn_params["bv"]
    gamma, beta = ln_params["gamma"], ln_params["beta"]

    h = hidden_dim
    h_pad = _round_up(h, 128)          # lane-dense hidden / output

    # ---- tile selection: multiples of 16 (bf16 sublane packing) ------------
    tile_q = min(max_tile_q, _round_up(nq, 16))
    n_q_tiles = _cdiv(nq, tile_q)
    if n_q_tiles < 2 and nq > 16:
        # Split a single-tile query grid so the "parallel" axis can shard
        # across both v7x TensorCores.
        tile_q = max(16, _round_up(_cdiv(nq, 2), 16))
        n_q_tiles = _cdiv(nq, tile_q)
    nq_pad = n_q_tiles * tile_q

    tile_k = min(max_tile_k, _round_up(nk, 16))
    n_k_tiles = _cdiv(nk, tile_k)
    nk_pad = n_k_tiles * tile_k
    needs_k_mask = nk_pad != nk

    # ---- zero-pad hidden on weights/biases/LN params (cheap, small ops) ----
    def pad_h(a):
        return a if h_pad == h else jnp.pad(a, ((0, 0), (0, h_pad - h)))

    wq_p = pad_h(wq).astype(jnp.bfloat16)                             # (dq, H_pad)
    bq_p = pad_h(bq)                                                  # (1, H_pad) f32
    wkv_p = jnp.concatenate([pad_h(wk), pad_h(wv)], axis=1).astype(jnp.bfloat16)
    bkv_p = jnp.concatenate([pad_h(bk), pad_h(bv)], axis=1)           # (1, 2*H_pad) f32
    gamma_p = pad_h(gamma)
    beta_p = pad_h(beta)

    # ---- pad token counts only (inputs stay f32; cast happens in-kernel) ---
    xq_p = x_q if nq_pad == nq else jnp.pad(x_q, ((0, nq_pad - nq), (0, 0)))
    xkv_p = x_kv if nk_pad == nk else jnp.pad(x_kv, ((0, nk_pad - nk), (0, 0)))

    # ---- explicit VMEM budget (double-buffered blocks + scratch) -----------
    attn_in_bytes = (tile_q * dq * 4            # x_q tile (f32)
                     + dq * h_pad * 2           # W_q (bf16)
                     + h_pad * 4                # b_q
                     + tile_k * 2 * h_pad * 2   # K|V tile (bf16)
                     + 2 * h_pad * 4)           # gamma, beta
    attn_out_bytes = tile_q * h_pad * 4
    attn_scratch = (tile_q * h_pad * 2          # q (bf16)
                    + 2 * tile_q * 128 * 4      # m, l (lane-padded)
                    + tile_q * h_pad * 4)       # acc
    budget = 2 * (attn_in_bytes + attn_out_bytes) + attn_scratch
    vmem_limit = int(min(max(budget * 5 // 4 + (4 << 20), 32 << 20), 48 << 20))
    cparams = pltpu.CompilerParams(
        dimension_semantics=("parallel", "arbitrary"),
        vmem_limit_bytes=vmem_limit)

    # ---- 1) project K|V once (bf16, lane-padded) ---------------------------
    kv = pl.pallas_call(
        _kv_proj_kernel,
        grid=(n_k_tiles,),
        in_specs=[
            pl.BlockSpec((tile_k, dk), lambda kt: (kt, 0)),           # x_kv
            pl.BlockSpec((dk, 2 * h_pad), lambda kt: (0, 0)),         # W_k|W_v
            pl.BlockSpec((1, 2 * h_pad), lambda kt: (0, 0)),          # b_k|b_v
        ],
        out_specs=pl.BlockSpec((tile_k, 2 * h_pad), lambda kt: (kt, 0)),
        out_shape=jax.ShapeDtypeStruct((nk_pad, 2 * h_pad), jnp.bfloat16),
        compiler_params=pltpu.CompilerParams(
            dimension_semantics=("parallel",),
            vmem_limit_bytes=vmem_limit),
        cost_estimate=pl.CostEstimate(
            flops=int(4 * nk_pad * dk * h_pad),
            transcendentals=0,
            bytes_accessed=int(nk_pad * dk * 4 + dk * 2 * h_pad * 2
                               + 2 * h_pad * 4 + nk_pad * 2 * h_pad * 2)),
    )(xkv_p, wkv_p, bkv_p)

    # ---- 2) flash cross-attention + fused LayerNorm -------------------------
    kernel = functools.partial(
        _raa_flash_kernel,
        scale=1.0 / math.sqrt(h), eps=1e-5,
        h_pad=h_pad, inv_h=1.0 / h, nk_real=nk, tile_k=tile_k,
        needs_k_mask=needs_k_mask)

    attn_flops = int(2 * nq_pad * dq * h_pad + 4 * nq_pad * nk_pad * h_pad)
    attn_bytes = int(nq_pad * dq * 4
                     + nk_pad * 2 * h_pad * 2 * n_q_tiles
                     + dq * h_pad * 2 + 3 * h_pad * 4
                     + nq_pad * h_pad * 4)

    y_pad = pl.pallas_call(
        kernel,
        grid=(n_q_tiles, n_k_tiles),
        in_specs=[
            pl.BlockSpec((tile_q, dq), lambda i, kt: (i, 0)),          # x_q (f32)
            pl.BlockSpec((dq, h_pad), lambda i, kt: (0, 0)),           # W_q (bf16)
            pl.BlockSpec((1, h_pad), lambda i, kt: (0, 0)),            # b_q
            pl.BlockSpec((tile_k, 2 * h_pad), lambda i, kt: (kt, 0)),  # K|V (bf16)
            pl.BlockSpec((1, h_pad), lambda i, kt: (0, 0)),            # gamma
            pl.BlockSpec((1, h_pad), lambda i, kt: (0, 0)),            # beta
        ],
        out_specs=pl.BlockSpec((tile_q, h_pad), lambda i, kt: (i, 0)),
        out_shape=jax.ShapeDtypeStruct((nq_pad, h_pad), out_dtype),
        scratch_shapes=[
            pltpu.VMEM((tile_q, h_pad), jnp.bfloat16),   # pre-scaled Q
            pltpu.VMEM((tile_q, 1), jnp.float32),        # running max
            pltpu.VMEM((tile_q, 1), jnp.float32),        # running denom
            pltpu.VMEM((tile_q, h_pad), jnp.float32),    # running output
        ],
        compiler_params=cparams,
        cost_estimate=pl.CostEstimate(
            flops=attn_flops,
            transcendentals=int(nq_pad * nk_pad + nq_pad * n_k_tiles),
            bytes_accessed=attn_bytes),
    )(xq_p, wq_p, bq_p, kv, gamma_p, beta_p)

    return y_pad[:nq, :h]


# ------------------------- parameter construction -------------------------

def _linear_params(key, in_dim, out_dim):
    """torch.nn.Linear-style init; weight stored pre-transposed as [in, out]."""
    kw, kb = jax.random.split(key)
    bound = 1.0 / math.sqrt(in_dim)
    w = jax.random.uniform(kw, (in_dim, out_dim), jnp.float32, -bound, bound)
    b = jax.random.uniform(kb, (1, out_dim), jnp.float32, -bound, bound)
    return w, b


def init_raa_layer_params(key, major_dim, minor_dim, hidden_dim):
    keys = jax.random.split(key, 6)

    def branch(kq, kk, kv_, q_dim, kv_dim):
        wq, bq = _linear_params(kq, q_dim, hidden_dim)
        wk, bk = _linear_params(kk, kv_dim, hidden_dim)
        wv, bv = _linear_params(kv_, kv_dim, hidden_dim)
        return dict(wq=wq, bq=bq, wk=wk, bk=bk, wv=wv, bv=bv)

    return {
        "attn_major": branch(keys[0], keys[1], keys[2], major_dim, minor_dim),
        "attn_minor": branch(keys[3], keys[4], keys[5], minor_dim, major_dim),
        "ln": dict(gamma=jnp.ones((1, hidden_dim), jnp.float32),
                   beta=jnp.zeros((1, hidden_dim), jnp.float32)),
    }


def raa_layer_forward(params, x_major, x_minor, major_dim, minor_dim,
                      hidden_dim, max_tile_q=512, max_tile_k=1024):
    """Equivalent of RAA_layer.forward (eval mode: dropout is identity)."""
    x_major = x_major.reshape(-1, major_dim)
    x_minor = x_minor.reshape(-1, minor_dim)
    y_major = raa_attention_block(x_major, x_minor, params["attn_major"],
                                  params["ln"], hidden_dim,
                                  max_tile_q=max_tile_q, max_tile_k=max_tile_k)
    y_minor = raa_attention_block(x_minor, x_major, params["attn_minor"],
                                  params["ln"], hidden_dim,
                                  max_tile_q=max_tile_q, max_tile_k=max_tile_k)
    return y_major, y_minor


# ----------------------------- pure-JAX reference -----------------------------

def _ref_branch(x_q, x_kv, p, ln, hidden_dim):
    q = x_q @ p["wq"] + p["bq"]
    k = x_kv @ p["wk"] + p["bk"]
    v = x_kv @ p["wv"] + p["bv"]
    s = (q @ k.T) / math.sqrt(hidden_dim)
    a = jax.nn.softmax(s, axis=-1)
    o = a @ v
    mu = o.mean(axis=-1, keepdims=True)
    var = ((o - mu) ** 2).mean(axis=-1, keepdims=True)
    return (o - mu) * jax.lax.rsqrt(var + 1e-5) * ln["gamma"] + ln["beta"]


if __name__ == "__main__":
    major_dim, minor_dim, hidden_dim = 16, 8, 32
    dropout_rate = 0.1  # eval mode: unused

    key = jax.random.PRNGKey(0)
    kp, kmaj, kmin = jax.random.split(key, 3)
    params = init_raa_layer_params(kp, major_dim, minor_dim, hidden_dim)

    # Non-multiple-of-tile token counts so padding/masking paths run:
    # x_major -> 60 tokens of dim 16, x_minor -> 26 tokens of dim 8.
    x_major = jax.random.normal(kmaj, (2, 30, major_dim), jnp.float32)
    x_minor = jax.random.normal(kmin, (2, 13, minor_dim), jnp.float32)

    # Small tile caps so the toy shapes exercise the multi-tile grid path.
    fwd = jax.jit(functools.partial(
        raa_layer_forward, major_dim=major_dim, minor_dim=minor_dim,
        hidden_dim=hidden_dim, max_tile_q=32, max_tile_k=16))
    y_major, y_minor = fwd(params, x_major, x_minor)
    jax.block_until_ready((y_major, y_minor))

    assert y_major.shape == (60, hidden_dim)
    assert y_minor.shape == (26, hidden_dim)

    # Pure-JAX f32 reference (kernel matmuls run in bf16 -> loose tolerance).
    ref_major = _ref_branch(x_major.reshape(-1, major_dim),
                            x_minor.reshape(-1, minor_dim),
                            params["attn_major"], params["ln"], hidden_dim)
    ref_minor = _ref_branch(x_minor.reshape(-1, minor_dim),
                            x_major.reshape(-1, major_dim),
                            params["attn_minor"], params["ln"], hidden_dim)
    err = max(float(jnp.max(jnp.abs(y_major - ref_major))),
              float(jnp.max(jnp.abs(y_minor - ref_minor))))
    assert bool(jnp.all(jnp.isfinite(y_major)) & jnp.all(jnp.isfinite(y_minor)))
    assert err < 2e-1, f"max abs error vs reference: {err}"

    print("KERNEL_OK")
</pallas_src>

<mosaic_0001>
module attributes {stable_mosaic.version = 11 : i64} {
  func.func @_kv_proj_kernel(%arg0: i32, %arg1: memref<16x8xf32, #tpu.memory_space<vmem>>, %arg2: memref<8x256xbf16, #tpu.memory_space<vmem>>, %arg3: memref<1x256xf32, #tpu.memory_space<vmem>>, %arg4: memref<16x256xbf16, #tpu.memory_space<vmem>>) attributes {dimension_semantics = [#tpu.dimension_semantics<parallel>], iteration_bounds = array<i64: 2>, scalar_prefetch = 0 : i64, scratch_operands = 0 : i64, tpu.core_type = #tpu.core_type<tc>, window_params = [{transform_indices = @transform_0, window_bounds = array<i64: 16, 8>}, {pipeline_mode = #tpu.pipeline_mode<synchronous>, transform_indices = @transform_1, window_bounds = array<i64: 8, 256>}, {pipeline_mode = #tpu.pipeline_mode<synchronous>, transform_indices = @transform_2, window_bounds = array<i64: 1, 256>}, {transform_indices = @transform_3, window_bounds = array<i64: 16, 256>}]} {
    %c0 = arith.constant 0 : index
    %c0_0 = arith.constant 0 : index
    %0 = vector.load %arg1[%c0, %c0_0] : memref<16x8xf32, #tpu.memory_space<vmem>>, vector<16x8xf32>
    %1 = arith.truncf %0 : vector<16x8xf32> to vector<16x8xbf16>
    %c0_1 = arith.constant 0 : index
    %c0_2 = arith.constant 0 : index
    %2 = vector.load %arg2[%c0_1, %c0_2] : memref<8x256xbf16, #tpu.memory_space<vmem>>, vector<8x256xbf16>
    %cst = arith.constant dense<0.000000e+00> : vector<16x256xf32>
    %3 = tpu.matmul %1, %2, %cst {dimension_numbers = #tpu.dot_dimension_numbers<[1], [0], [0], [1], [0, 0, 1, 1], [], []>} : vector<16x8xbf16>, vector<8x256xbf16>, vector<16x256xf32> -> vector<16x256xf32>
    %c0_3 = arith.constant 0 : index
    %c0_4 = arith.constant 0 : index
    %4 = vector.load %arg3[%c0_3, %c0_4] : memref<1x256xf32, #tpu.memory_space<vmem>>, vector<1x256xf32>
    %5 = vector.broadcast %4 : vector<1x256xf32> to vector<16x256xf32>
    %6 = arith.addf %3, %5 : vector<16x256xf32>
    %7 = arith.truncf %6 : vector<16x256xf32> to vector<16x256xbf16>
    %c0_5 = arith.constant 0 : index
    %c0_6 = arith.constant 0 : index
    %8 = vector.load %arg4[%c0_5, %c0_6] : memref<16x256xbf16, #tpu.memory_space<vmem>>, vector<16x256xbf16>
    tpu.vector_store %arg4[%c0_5, %c0_6], %7 {strides = array<i32>} : memref<16x256xbf16, #tpu.memory_space<vmem>>, vector<16x256xbf16>,
    return
  }
  func.func @transform_0(%arg0: i32) -> (i32, i32) {
    %c0_i32 = arith.constant 0 : i32
    %c0_i32_0 = arith.constant 0 : i32
    return %arg0, %c0_i32 : i32, i32
  }
  func.func @transform_1(%arg0: i32) -> (i32, i32) {
    %c0_i32 = arith.constant 0 : i32
    %c0_i32_0 = arith.constant 0 : i32
    %c0_i32_1 = arith.constant 0 : i32
    return %c0_i32, %c0_i32_0 : i32, i32
  }
  func.func @transform_2(%arg0: i32) -> (i32, i32) {
    %c0_i32 = arith.constant 0 : i32
    %c0_i32_0 = arith.constant 0 : i32
    %c0_i32_1 = arith.constant 0 : i32
    return %c0_i32, %c0_i32_0 : i32, i32
  }
  func.func @transform_3(%arg0: i32) -> (i32, i32) {
    %c0_i32 = arith.constant 0 : i32
    %c0_i32_0 = arith.constant 0 : i32
    return %arg0, %c0_i32 : i32, i32
  }
}

module attributes {stable_mosaic.version = 11 : i64} {
  func.func @_kv_proj_kernel(%arg0: i32, %arg1: memref<16x16xf32, #tpu.memory_space<vmem>>, %arg2: memref<16x256xbf16, #tpu.memory_space<vmem>>, %arg3: memref<1x256xf32, #tpu.memory_space<vmem>>, %arg4: memref<16x256xbf16, #tpu.memory_space<vmem>>) attributes {dimension_semantics = [#tpu.dimension_semantics<parallel>], iteration_bounds = array<i64: 4>, scalar_prefetch = 0 : i64, scratch_operands = 0 : i64, tpu.core_type = #tpu.core_type<tc>, window_params = [{transform_indices = @transform_0, window_bounds = array<i64: 16, 16>}, {pipeline_mode = #tpu.pipeline_mode<synchronous>, transform_indices = @transform_1, window_bounds = array<i64: 16, 256>}, {pipeline_mode = #tpu.pipeline_mode<synchronous>, transform_indices = @transform_2, window_bounds = array<i64: 1, 256>}, {transform_indices = @transform_3, window_bounds = array<i64: 16, 256>}]} {
    %c0 = arith.constant 0 : index
    %c0_0 = arith.constant 0 : index
    %0 = vector.load %arg1[%c0, %c0_0] : memref<16x16xf32, #tpu.memory_space<vmem>>, vector<16x16xf32>
    %1 = arith.truncf %0 : vector<16x16xf32> to vector<16x16xbf16>
    %c0_1 = arith.constant 0 : index
    %c0_2 = arith.constant 0 : index
    %2 = vector.load %arg2[%c0_1, %c0_2] : memref<16x256xbf16, #tpu.memory_space<vmem>>, vector<16x256xbf16>
    %cst = arith.constant dense<0.000000e+00> : vector<16x256xf32>
    %3 = tpu.matmul %1, %2, %cst {dimension_numbers = #tpu.dot_dimension_numbers<[1], [0], [0], [1], [0, 0, 1, 1], [], []>} : vector<16x16xbf16>, vector<16x256xbf16>, vector<16x256xf32> -> vector<16x256xf32>
    %c0_3 = arith.constant 0 : index
    %c0_4 = arith.constant 0 : index
    %4 = vector.load %arg3[%c0_3, %c0_4] : memref<1x256xf32, #tpu.memory_space<vmem>>, vector<1x256xf32>
    %5 = vector.broadcast %4 : vector<1x256xf32> to vector<16x256xf32>
    %6 = arith.addf %3, %5 : vector<16x256xf32>
    %7 = arith.truncf %6 : vector<16x256xf32> to vector<16x256xbf16>
    %c0_5 = arith.constant 0 : index
    %c0_6 = arith.constant 0 : index
    %8 = vector.load %arg4[%c0_5, %c0_6] : memref<16x256xbf16, #tpu.memory_space<vmem>>, vector<16x256xbf16>
    tpu.vector_store %arg4[%c0_5, %c0_6], %7 {strides = array<i32>} : memref<16x256xbf16, #tpu.memory_space<vmem>>, vector<16x256xbf16>,
    return
  }
  func.func @transform_0(%arg0: i32) -> (i32, i32) {
    %c0_i32 = arith.constant 0 : i32
    %c0_i32_0 = arith.constant 0 : i32
    return %arg0, %c0_i32 : i32, i32
  }
  func.func @transform_1(%arg0: i32) -> (i32, i32) {
    %c0_i32 = arith.constant 0 : i32
    %c0_i32_0 = arith.constant 0 : i32
    %c0_i32_1 = arith.constant 0 : i32
    return %c0_i32, %c0_i32_0 : i32, i32
  }
  func.func @transform_2(%arg0: i32) -> (i32, i32) {
    %c0_i32 = arith.constant 0 : i32
    %c0_i32_0 = arith.constant 0 : i32
    %c0_i32_1 = arith.constant 0 : i32
    return %c0_i32, %c0_i32_0 : i32, i32
  }
  func.func @transform_3(%arg0: i32) -> (i32, i32) {
    %c0_i32 = arith.constant 0 : i32
    %c0_i32_0 = arith.constant 0 : i32
    return %arg0, %c0_i32 : i32, i32
  }
}

module attributes {stable_mosaic.version = 11 : i64} {
  func.func @_raa_flash_kernel(%arg0: i32, %arg1: i32, %arg2: memref<32x16xf32, #tpu.memory_space<vmem>>, %arg3: memref<16x128xbf16, #tpu.memory_space<vmem>>, %arg4: memref<1x128xf32, #tpu.memory_space<vmem>>, %arg5: memref<16x256xbf16, #tpu.memory_space<vmem>>, %arg6: memref<1x128xf32, #tpu.memory_space<vmem>>, %arg7: memref<1x128xf32, #tpu.memory_space<vmem>>, %arg8: memref<32x128xf32, #tpu.memory_space<vmem>>, %arg9: memref<32x128xbf16, #tpu.memory_space<vmem>>, %arg10: memref<32x1xf32, #tpu.memory_space<vmem>>, %arg11: memref<32x1xf32, #tpu.memory_space<vmem>>, %arg12: memref<32x128xf32, #tpu.memory_space<vmem>>) attributes {dimension_semantics = [#tpu.dimension_semantics<parallel>, #tpu.dimension_semantics<arbitrary>], iteration_bounds = array<i64: 2, 2>, scalar_prefetch = 0 : i64, scratch_operands = 4 : i64, tpu.core_type = #tpu.core_type<tc>, window_params = [{transform_indices = @transform_0, window_bounds = array<i64: 32, 16>}, {pipeline_mode = #tpu.pipeline_mode<synchronous>, transform_indices = @transform_1, window_bounds = array<i64: 16, 128>}, {pipeline_mode = #tpu.pipeline_mode<synchronous>, transform_indices = @transform_2, window_bounds = array<i64: 1, 128>}, {transform_indices = @transform_3, window_bounds = array<i64: 16, 256>}, {pipeline_mode = #tpu.pipeline_mode<synchronous>, transform_indices = @transform_4, window_bounds = array<i64: 1, 128>}, {pipeline_mode = #tpu.pipeline_mode<synchronous>, transform_indices = @transform_5, window_bounds = array<i64: 1, 128>}, {transform_indices = @transform_6, window_bounds = array<i64: 32, 128>}]} {
    %c0_i32 = arith.constant 0 : i32
    %0 = arith.cmpi eq, %arg1, %c0_i32 : i32
    %1 = arith.extui %0 : i1 to i32
    %c0_i32_0 = arith.constant 0 : i32
    %2 = arith.cmpi ne, %1, %c0_i32_0 : i32
    scf.if %2 {
      %c0_23 = arith.constant 0 : index
      %c0_24 = arith.constant 0 : index
      %45 = vector.load %arg2[%c0_23, %c0_24] : memref<32x16xf32, #tpu.memory_space<vmem>>, vector<32x16xf32>
      %46 = arith.truncf %45 : vector<32x16xf32> to vector<32x16xbf16>
      %c0_25 = arith.constant 0 : index
      %c0_26 = arith.constant 0 : index
      %47 = vector.load %arg3[%c0_25, %c0_26] : memref<16x128xbf16, #tpu.memory_space<vmem>>, vector<16x128xbf16>
      %cst_27 = arith.constant dense<0.000000e+00> : vector<32x128xf32>
      %48 = tpu.matmul %46, %47, %cst_27 {dimension_numbers = #tpu.dot_dimension_numbers<[1], [0], [0], [1], [0, 0, 1, 1], [], []>} : vector<32x16xbf16>, vector<16x128xbf16>, vector<32x128xf32> -> vector<32x128xf32>
      %c0_28 = arith.constant 0 : index
      %c0_29 = arith.constant 0 : index
      %49 = vector.load %arg4[%c0_28, %c0_29] : memref<1x128xf32, #tpu.memory_space<vmem>>, vector<1x128xf32>
      %50 = vector.broadcast %49 : vector<1x128xf32> to vector<32x128xf32>
      %51 = arith.addf %48, %50 : vector<32x128xf32>
      %cst_30 = arith.constant 0.176776692 : f32
      %52 = vector.broadcast %cst_30 : f32 to vector<32x128xf32>
      %53 = arith.mulf %51, %52 : vector<32x128xf32>
      %54 = arith.truncf %53 : vector<32x128xf32> to vector<32x128xbf16>
      %c0_31 = arith.constant 0 : index
      %c0_32 = arith.constant 0 : index
      %55 = vector.load %arg9[%c0_31, %c0_32] : memref<32x128xbf16, #tpu.memory_space<vmem>>, vector<32x128xbf16>
      tpu.vector_store %arg9[%c0_31, %c0_32], %54 {strides = array<i32>} : memref<32x128xbf16, #tpu.memory_space<vmem>>, vector<32x128xbf16>,
      %cst_33 = arith.constant 0xFF800000 : f32
      %56 = vector.broadcast %cst_33 : f32 to vector<32x1xf32>
      %c0_34 = arith.constant 0 : index
      %c0_35 = arith.constant 0 : index
      %57 = vector.load %arg10[%c0_34, %c0_35] : memref<32x1xf32, #tpu.memory_space<vmem>>, vector<32x1xf32>
      tpu.vector_store %arg10[%c0_34, %c0_35], %56 {strides = array<i32>} : memref<32x1xf32, #tpu.memory_space<vmem>>, vector<32x1xf32>,
      %cst_36 = arith.constant 0.000000e+00 : f32
      %58 = vector.broadcast %cst_36 : f32 to vector<32x1xf32>
      %c0_37 = arith.constant 0 : index
      %c0_38 = arith.constant 0 : index
      %59 = vector.load %arg11[%c0_37, %c0_38] : memref<32x1xf32, #tpu.memory_space<vmem>>, vector<32x1xf32>
      tpu.vector_store %arg11[%c0_37, %c0_38], %58 {strides = array<i32>} : memref<32x1xf32, #tpu.memory_space<vmem>>, vector<32x1xf32>,
      %cst_39 = arith.constant 0.000000e+00 : f32
      %60 = vector.broadcast %cst_39 : f32 to vector<32x128xf32>
      %c0_40 = arith.constant 0 : index
      %c0_41 = arith.constant 0 : index
      %61 = vector.load %arg12[%c0_40, %c0_41] : memref<32x128xf32, #tpu.memory_space<vmem>>, vector<32x128xf32>
      tpu.vector_store %arg12[%c0_40, %c0_41], %60 {strides = array<i32>} : memref<32x128xf32, #tpu.memory_space<vmem>>, vector<32x128xf32>,
    } else {
    }
    %c0 = arith.constant 0 : index
    %c0_1 = arith.constant 0 : index
    %3 = vector.load %arg5[%c0, %c0_1] : memref<16x256xbf16, #tpu.memory_space<vmem>>, vector<16x256xbf16>
    %4 = vector.extract_strided_slice %3 {offsets = [0, 0], sizes = [16, 128], strides = [1, 1]} : vector<16x256xbf16> to vector<16x128xbf16>
    %5 = vector.extract_strided_slice %3 {offsets = [0, 128], sizes = [16, 128], strides = [1, 1]} : vector<16x256xbf16> to vector<16x128xbf16>
    %c0_2 = arith.constant 0 : index
    %c0_3 = arith.constant 0 : index
    %6 = vector.load %arg9[%c0_2, %c0_3] : memref<32x128xbf16, #tpu.memory_space<vmem>>, vector<32x128xbf16>
    %cst = arith.constant dense<0.000000e+00> : vector<32x16xf32>
    %7 = tpu.matmul %6, %4, %cst {dimension_numbers = #tpu.dot_dimension_numbers<[1], [1], [0], [0], [0, 0, 1, 0], [], []>} : vector<32x128xbf16>, vector<16x128xbf16>, vector<32x16xf32> -> vector<32x16xf32>
    %c16_i32 = arith.constant 16 : i32
    %8 = arith.muli %arg1, %c16_i32 : i32
    %9 = tpu.iota {dimensions = array<i32: 1>} : vector<1x16xi32>
    %10 = vector.broadcast %8 : i32 to vector<1x16xi32>
    %11 = arith.addi %10, %9 : vector<1x16xi32>
    %c26_i32 = arith.constant 26 : i32
    %12 = vector.broadcast %c26_i32 : i32 to vector<1x16xi32>
    %13 = arith.cmpi slt, %11, %12 : vector<1x16xi32>
    %cst_4 = arith.constant -1.000000e+30 : f32
    %14 = vector.shape_cast %13 : vector<1x16xi1> to vector<1x16xi1>
    %15 = vector.broadcast %14 : vector<1x16xi1> to vector<32x16xi1>
    %16 = vector.broadcast %cst_4 : f32 to vector<32x16xf32>
    %17 = arith.select %15, %7, %16 : vector<32x16xi1>, vector<32x16xf32>
    %c0_5 = arith.constant 0 : index
    %c0_6 = arith.constant 0 : index
    %18 = vector.load %arg10[%c0_5, %c0_6] : memref<32x1xf32, #tpu.memory_space<vmem>>, vector<32x1xf32>
    %cst_7 = arith.constant dense<0xFF800000> : vector<32xf32>
    %19 = vector.multi_reduction <maximumf>, %17, %cst_7 [1] : vector<32x16xf32> to vector<32xf32>
    %20 = vector.shape_cast %19 : vector<32xf32> to vector<32x1xf32>
    %21 = arith.maximumf %18, %20 : vector<32x1xf32>
    %c0_8 = arith.constant 0 : index
    %c0_9 = arith.constant 0 : index
    %22 = vector.load %arg10[%c0_8, %c0_9] : memref<32x1xf32, #tpu.memory_space<vmem>>, vector<32x1xf32>
    %23 = arith.subf %22, %21 : vector<32x1xf32>
    %24 = math.exp %23 : vector<32x1xf32>
    %25 = vector.broadcast %21 : vector<32x1xf32> to vector<32x16xf32>
    %26 = arith.subf %17, %25 : vector<32x16xf32>
    %27 = math.exp %26 : vector<32x16xf32>
    %c0_10 = arith.constant 0 : index
    %c0_11 = arith.constant 0 : index
    %28 = vector.load %arg11[%c0_10, %c0_11] : memref<32x1xf32, #tpu.memory_space<vmem>>, vector<32x1xf32>
    %29 = arith.mulf %24, %28 : vector<32x1xf32>
    %cst_12 = arith.constant dense<0.000000e+00> : vector<32xf32>
    %30 = vector.multi_reduction <add>, %27, %cst_12 [1] : vector<32x16xf32> to vector<32xf32>
    %31 = vector.shape_cast %30 : vector<32xf32> to vector<32x1xf32>
    %32 = arith.addf %29, %31 : vector<32x1xf32>
    %c0_13 = arith.constant 0 : index
    %c0_14 = arith.constant 0 : index
    %33 = vector.load %arg11[%c0_13, %c0_14] : memref<32x1xf32, #tpu.memory_space<vmem>>, vector<32x1xf32>
    tpu.vector_store %arg11[%c0_13, %c0_14], %32 {strides = array<i32>} : memref<32x1xf32, #tpu.memory_space<vmem>>, vector<32x1xf32>,
    %c0_15 = arith.constant 0 : index
    %c0_16 = arith.constant 0 : index
    %34 = vector.load %arg12[%c0_15, %c0_16] : memref<32x128xf32, #tpu.memory_space<vmem>>, vector<32x128xf32>
    %35 = vector.broadcast %24 : vector<32x1xf32> to vector<32x128xf32>
    %36 = arith.mulf %35, %34 : vector<32x128xf32>
    %37 = arith.truncf %27 : vector<32x16xf32> to vector<32x16xbf16>
    %cst_17 = arith.constant dense<0.000000e+00> : vector<32x128xf32>
    %38 = tpu.matmul %37, %5, %cst_17 {dimension_numbers = #tpu.dot_dimension_numbers<[1], [0], [0], [1], [0, 0, 1, 1], [], []>} : vector<32x16xbf16>, vector<16x128xbf16>, vector<32x128xf32> -> vector<32x128xf32>
    %39 = arith.addf %36, %38 : vector<32x128xf32>
    %c0_18 = arith.constant 0 : index
    %c0_19 = arith.constant 0 : index
    %40 = vector.load %arg12[%c0_18, %c0_19] : memref<32x128xf32, #tpu.memory_space<vmem>>, vector<32x128xf32>
    tpu.vector_store %arg12[%c0_18, %c0_19], %39 {strides = array<i32>} : memref<32x128xf32, #tpu.memory_space<vmem>>, vector<32x128xf32>,
    %c0_20 = arith.constant 0 : index
    %c0_21 = arith.constant 0 : index
    %41 = vector.load %arg10[%c0_20, %c0_21] : memref<32x1xf32, #tpu.memory_space<vmem>>, vector<32x1xf32>
    tpu.vector_store %arg10[%c0_20, %c0_21], %21 {strides = array<i32>} : memref<32x1xf32, #tpu.memory_space<vmem>>, vector<32x1xf32>,
    %c1_i32 = arith.constant 1 : i32
    %42 = arith.cmpi eq, %arg1, %c1_i32 : i32
    %43 = arith.extui %42 : i1 to i32
    %c0_i32_22 = arith.constant 0 : i32
    %44 = arith.cmpi ne, %43, %c0_i32_22 : i32
    scf.if %44 {
      %c0_23 = arith.constant 0 : index
      %c0_24 = arith.constant 0 : index
      %45 = vector.load %arg12[%c0_23, %c0_24] : memref<32x128xf32, #tpu.memory_space<vmem>>, vector<32x128xf32>
      %c0_25 = arith.constant 0 : index
      %c0_26 = arith.constant 0 : index
      %46 = vector.load %arg11[%c0_25, %c0_26] : memref<32x1xf32, #tpu.memory_space<vmem>>, vector<32x1xf32>
      %47 = tpu.reciprocal %46 {approx = true} : vector<32x1xf32> -> vector<32x1xf32>
      %48 = vector.broadcast %47 : vector<32x1xf32> to vector<32x128xf32>
      %49 = arith.mulf %45, %48 : vector<32x128xf32>
      %cst_27 = arith.constant dense<0.000000e+00> : vector<32xf32>
      %50 = vector.multi_reduction <add>, %49, %cst_27 [1] : vector<32x128xf32> to vector<32xf32>
      %51 = vector.shape_cast %50 : vector<32xf32> to vector<32x1xf32>
      %cst_28 = arith.constant 3.125000e-02 : f32
      %52 = vector.broadcast %cst_28 : f32 to vector<32x1xf32>
      %53 = arith.mulf %51, %52 : vector<32x1xf32>
      %54 = arith.mulf %49, %49 : vector<32x128xf32>
      %cst_29 = arith.constant dense<0.000000e+00> : vector<32xf32>
      %55 = vector.multi_reduction <add>, %54, %cst_29 [1] : vector<32x128xf32> to vector<32xf32>
      %56 = vector.shape_cast %55 : vector<32xf32> to vector<32x1xf32>
      %cst_30 = arith.constant 3.125000e-02 : f32
      %57 = vector.broadcast %cst_30 : f32 to vector<32x1xf32>
      %58 = arith.mulf %56, %57 : vector<32x1xf32>
      %59 = arith.mulf %53, %53 : vector<32x1xf32>
      %60 = arith.subf %58, %59 : vector<32x1xf32>
      %cst_31 = arith.constant 9.99999974E-6 : f32
      %61 = vector.broadcast %cst_31 : f32 to vector<32x1xf32>
      %62 = arith.addf %60, %61 : vector<32x1xf32>
      %63 = math.rsqrt %62 : vector<32x1xf32>
      %64 = vector.broadcast %53 : vector<32x1xf32> to vector<32x128xf32>
      %65 = arith.subf %49, %64 : vector<32x128xf32>
      %66 = vector.broadcast %63 : vector<32x1xf32> to vector<32x128xf32>
      %67 = arith.mulf %65, %66 : vector<32x128xf32>
      %c0_32 = arith.constant 0 : index
      %c0_33 = arith.constant 0 : index
      %68 = vector.load %arg6[%c0_32, %c0_33] : memref<1x128xf32, #tpu.memory_space<vmem>>, vector<1x128xf32>
      %69 = vector.broadcast %68 : vector<1x128xf32> to vector<32x128xf32>
      %70 = arith.mulf %67, %69 : vector<32x128xf32>
      %c0_34 = arith.constant 0 : index
      %c0_35 = arith.constant 0 : index
      %71 = vector.load %arg7[%c0_34, %c0_35] : memref<1x128xf32, #tpu.memory_space<vmem>>, vector<1x128xf32>
      %72 = vector.broadcast %71 : vector<1x128xf32> to vector<32x128xf32>
      %73 = arith.addf %70, %72 : vector<32x128xf32>
      %c0_36 = arith.constant 0 : index
      %c0_37 = arith.constant 0 : index
      %74 = vector.load %arg8[%c0_36, %c0_37] : memref<32x128xf32, #tpu.memory_space<vmem>>, vector<32x128xf32>
      tpu.vector_store %arg8[%c0_36, %c0_37], %73 {strides = array<i32>} : memref<32x128xf32, #tpu.memory_space<vmem>>, vector<32x128xf32>,
    } else {
    }
    return
  }
  func.func @transform_0(%arg0: i32, %arg1: i32) -> (i32, i32) {
    %c0_i32 = arith.constant 0 : i32
    %c0_i32_0 = arith.constant 0 : i32
    return %arg0, %c0_i32 : i32, i32
  }
  func.func @transform_1(%arg0: i32, %arg1: i32) -> (i32, i32) {
    %c0_i32 = arith.constant 0 : i32
    %c0_i32_0 = arith.constant 0 : i32
    %c0_i32_1 = arith.constant 0 : i32
    return %c0_i32, %c0_i32_0 : i32, i32
  }
  func.func @transform_2(%arg0: i32, %arg1: i32) -> (i32, i32) {
    %c0_i32 = arith.constant 0 : i32
    %c0_i32_0 = arith.constant 0 : i32
    %c0_i32_1 = arith.constant 0 : i32
    return %c0_i32, %c0_i32_0 : i32, i32
  }
  func.func @transform_3(%arg0: i32, %arg1: i32) -> (i32, i32) {
    %c0_i32 = arith.constant 0 : i32
    %c0_i32_0 = arith.constant 0 : i32
    return %arg1, %c0_i32 : i32, i32
  }
  func.func @transform_4(%arg0: i32, %arg1: i32) -> (i32, i32) {
    %c0_i32 = arith.constant 0 : i32
    %c0_i32_0 = arith.constant 0 : i32
    %c0_i32_1 = arith.constant 0 : i32
    return %c0_i32, %c0_i32_0 : i32, i32
  }
  func.func @transform_5(%arg0: i32, %arg1: i32) -> (i32, i32) {
    %c0_i32 = arith.constant 0 : i32
    %c0_i32_0 = arith.constant 0 : i32
    %c0_i32_1 = arith.constant 0 : i32
    return %c0_i32, %c0_i32_0 : i32, i32
  }
  func.func @transform_6(%arg0: i32, %arg1: i32) -> (i32, i32) {
    %c0_i32 = arith.constant 0 : i32
    %c0_i32_0 = arith.constant 0 : i32
    return %arg0, %c0_i32 : i32, i32
  }
}

module attributes {stable_mosaic.version = 11 : i64} {
  func.func @_raa_flash_kernel(%arg0: i32, %arg1: i32, %arg2: memref<16x8xf32, #tpu.memory_space<vmem>>, %arg3: memref<8x128xbf16, #tpu.memory_space<vmem>>, %arg4: memref<1x128xf32, #tpu.memory_space<vmem>>, %arg5: memref<16x256xbf16, #tpu.memory_space<vmem>>, %arg6: memref<1x128xf32, #tpu.memory_space<vmem>>, %arg7: memref<1x128xf32, #tpu.memory_space<vmem>>, %arg8: memref<16x128xf32, #tpu.memory_space<vmem>>, %arg9: memref<16x128xbf16, #tpu.memory_space<vmem>>, %arg10: memref<16x1xf32, #tpu.memory_space<vmem>>, %arg11: memref<16x1xf32, #tpu.memory_space<vmem>>, %arg12: memref<16x128xf32, #tpu.memory_space<vmem>>) attributes {dimension_semantics = [#tpu.dimension_semantics<parallel>, #tpu.dimension_semantics<arbitrary>], iteration_bounds = array<i64: 2, 4>, scalar_prefetch = 0 : i64, scratch_operands = 4 : i64, tpu.core_type = #tpu.core_type<tc>, window_params = [{transform_indices = @transform_0, window_bounds = array<i64: 16, 8>}, {pipeline_mode = #tpu.pipeline_mode<synchronous>, transform_indices = @transform_1, window_bounds = array<i64: 8, 128>}, {pipeline_mode = #tpu.pipeline_mode<synchronous>, transform_indices = @transform_2, window_bounds = array<i64: 1, 128>}, {transform_indices = @transform_3, window_bounds = array<i64: 16, 256>}, {pipeline_mode = #tpu.pipeline_mode<synchronous>, transform_indices = @transform_4, window_bounds = array<i64: 1, 128>}, {pipeline_mode = #tpu.pipeline_mode<synchronous>, transform_indices = @transform_5, window_bounds = array<i64: 1, 128>}, {transform_indices = @transform_6, window_bounds = array<i64: 16, 128>}]} {
    %c0_i32 = arith.constant 0 : i32
    %0 = arith.cmpi eq, %arg1, %c0_i32 : i32
    %1 = arith.extui %0 : i1 to i32
    %c0_i32_0 = arith.constant 0 : i32
    %2 = arith.cmpi ne, %1, %c0_i32_0 : i32
    scf.if %2 {
      %c0_23 = arith.constant 0 : index
      %c0_24 = arith.constant 0 : index
      %45 = vector.load %arg2[%c0_23, %c0_24] : memref<16x8xf32, #tpu.memory_space<vmem>>, vector<16x8xf32>
      %46 = arith.truncf %45 : vector<16x8xf32> to vector<16x8xbf16>
      %c0_25 = arith.constant 0 : index
      %c0_26 = arith.constant 0 : index
      %47 = vector.load %arg3[%c0_25, %c0_26] : memref<8x128xbf16, #tpu.memory_space<vmem>>, vector<8x128xbf16>
      %cst_27 = arith.constant dense<0.000000e+00> : vector<16x128xf32>
      %48 = tpu.matmul %46, %47, %cst_27 {dimension_numbers = #tpu.dot_dimension_numbers<[1], [0], [0], [1], [0, 0, 1, 1], [], []>} : vector<16x8xbf16>, vector<8x128xbf16>, vector<16x128xf32> -> vector<16x128xf32>
      %c0_28 = arith.constant 0 : index
      %c0_29 = arith.constant 0 : index
      %49 = vector.load %arg4[%c0_28, %c0_29] : memref<1x128xf32, #tpu.memory_space<vmem>>, vector<1x128xf32>
      %50 = vector.broadcast %49 : vector<1x128xf32> to vector<16x128xf32>
      %51 = arith.addf %48, %50 : vector<16x128xf32>
      %cst_30 = arith.constant 0.176776692 : f32
      %52 = vector.broadcast %cst_30 : f32 to vector<16x128xf32>
      %53 = arith.mulf %51, %52 : vector<16x128xf32>
      %54 = arith.truncf %53 : vector<16x128xf32> to vector<16x128xbf16>
      %c0_31 = arith.constant 0 : index
      %c0_32 = arith.constant 0 : index
      %55 = vector.load %arg9[%c0_31, %c0_32] : memref<16x128xbf16, #tpu.memory_space<vmem>>, vector<16x128xbf16>
      tpu.vector_store %arg9[%c0_31, %c0_32], %54 {strides = array<i32>} : memref<16x128xbf16, #tpu.memory_space<vmem>>, vector<16x128xbf16>,
      %cst_33 = arith.constant 0xFF800000 : f32
      %56 = vector.broadcast %cst_33 : f32 to vector<16x1xf32>
      %c0_34 = arith.constant 0 : index
      %c0_35 = arith.constant 0 : index
      %57 = vector.load %arg10[%c0_34, %c0_35] : memref<16x1xf32, #tpu.memory_space<vmem>>, vector<16x1xf32>
      tpu.vector_store %arg10[%c0_34, %c0_35], %56 {strides = array<i32>} : memref<16x1xf32, #tpu.memory_space<vmem>>, vector<16x1xf32>,
      %cst_36 = arith.constant 0.000000e+00 : f32
      %58 = vector.broadcast %cst_36 : f32 to vector<16x1xf32>
      %c0_37 = arith.constant 0 : index
      %c0_38 = arith.constant 0 : index
      %59 = vector.load %arg11[%c0_37, %c0_38] : memref<16x1xf32, #tpu.memory_space<vmem>>, vector<16x1xf32>
      tpu.vector_store %arg11[%c0_37, %c0_38], %58 {strides = array<i32>} : memref<16x1xf32, #tpu.memory_space<vmem>>, vector<16x1xf32>,
      %cst_39 = arith.constant 0.000000e+00 : f32
      %60 = vector.broadcast %cst_39 : f32 to vector<16x128xf32>
      %c0_40 = arith.constant 0 : index
      %c0_41 = arith.constant 0 : index
      %61 = vector.load %arg12[%c0_40, %c0_41] : memref<16x128xf32, #tpu.memory_space<vmem>>, vector<16x128xf32>
      tpu.vector_store %arg12[%c0_40, %c0_41], %60 {strides = array<i32>} : memref<16x128xf32, #tpu.memory_space<vmem>>, vector<16x128xf32>,
    } else {
    }
    %c0 = arith.constant 0 : index
    %c0_1 = arith.constant 0 : index
    %3 = vector.load %arg5[%c0, %c0_1] : memref<16x256xbf16, #tpu.memory_space<vmem>>, vector<16x256xbf16>
    %4 = vector.extract_strided_slice %3 {offsets = [0, 0], sizes = [16, 128], strides = [1, 1]} : vector<16x256xbf16> to vector<16x128xbf16>
    %5 = vector.extract_strided_slice %3 {offsets = [0, 128], sizes = [16, 128], strides = [1, 1]} : vector<16x256xbf16> to vector<16x128xbf16>
    %c0_2 = arith.constant 0 : index
    %c0_3 = arith.constant 0 : index
    %6 = vector.load %arg9[%c0_2, %c0_3] : memref<16x128xbf16, #tpu.memory_space<vmem>>, vector<16x128xbf16>
    %cst = arith.constant dense<0.000000e+00> : vector<16x16xf32>
    %7 = tpu.matmul %6, %4, %cst {dimension_numbers = #tpu.dot_dimension_numbers<[1], [1], [0], [0], [0, 0, 1, 0], [], []>} : vector<16x128xbf16>, vector<16x128xbf16>, vector<16x16xf32> -> vector<16x16xf32>
    %c16_i32 = arith.constant 16 : i32
    %8 = arith.muli %arg1, %c16_i32 : i32
    %9 = tpu.iota {dimensions = array<i32: 1>} : vector<1x16xi32>
    %10 = vector.broadcast %8 : i32 to vector<1x16xi32>
    %11 = arith.addi %10, %9 : vector<1x16xi32>
    %c60_i32 = arith.constant 60 : i32
    %12 = vector.broadcast %c60_i32 : i32 to vector<1x16xi32>
    %13 = arith.cmpi slt, %11, %12 : vector<1x16xi32>
    %cst_4 = arith.constant -1.000000e+30 : f32
    %14 = vector.shape_cast %13 : vector<1x16xi1> to vector<1x16xi1>
    %15 = vector.broadcast %14 : vector<1x16xi1> to vector<16x16xi1>
    %16 = vector.broadcast %cst_4 : f32 to vector<16x16xf32>
    %17 = arith.select %15, %7, %16 : vector<16x16xi1>, vector<16x16xf32>
    %c0_5 = arith.constant 0 : index
    %c0_6 = arith.constant 0 : index
    %18 = vector.load %arg10[%c0_5, %c0_6] : memref<16x1xf32, #tpu.memory_space<vmem>>, vector<16x1xf32>
    %cst_7 = arith.constant dense<0xFF800000> : vector<16xf32>
    %19 = vector.multi_reduction <maximumf>, %17, %cst_7 [1] : vector<16x16xf32> to vector<16xf32>
    %20 = vector.shape_cast %19 : vector<16xf32> to vector<16x1xf32>
    %21 = arith.maximumf %18, %20 : vector<16x1xf32>
    %c0_8 = arith.constant 0 : index
    %c0_9 = arith.constant 0 : index
    %22 = vector.load %arg10[%c0_8, %c0_9] : memref<16x1xf32, #tpu.memory_space<vmem>>, vector<16x1xf32>
    %23 = arith.subf %22, %21 : vector<16x1xf32>
    %24 = math.exp %23 : vector<16x1xf32>
    %25 = vector.broadcast %21 : vector<16x1xf32> to vector<16x16xf32>
    %26 = arith.subf %17, %25 : vector<16x16xf32>
    %27 = math.exp %26 : vector<16x16xf32>
    %c0_10 = arith.constant 0 : index
    %c0_11 = arith.constant 0 : index
    %28 = vector.load %arg11[%c0_10, %c0_11] : memref<16x1xf32, #tpu.memory_space<vmem>>, vector<16x1xf32>
    %29 = arith.mulf %24, %28 : vector<16x1xf32>
    %cst_12 = arith.constant dense<0.000000e+00> : vector<16xf32>
    %30 = vector.multi_reduction <add>, %27, %cst_12 [1] : vector<16x16xf32> to vector<16xf32>
    %31 = vector.shape_cast %30 : vector<16xf32> to vector<16x1xf32>
    %32 = arith.addf %29, %31 : vector<16x1xf32>
    %c0_13 = arith.constant 0 : index
    %c0_14 = arith.constant 0 : index
    %33 = vector.load %arg11[%c0_13, %c0_14] : memref<16x1xf32, #tpu.memory_space<vmem>>, vector<16x1xf32>
    tpu.vector_store %arg11[%c0_13, %c0_14], %32 {strides = array<i32>} : memref<16x1xf32, #tpu.memory_space<vmem>>, vector<16x1xf32>,
    %c0_15 = arith.constant 0 : index
    %c0_16 = arith.constant 0 : index
    %34 = vector.load %arg12[%c0_15, %c0_16] : memref<16x128xf32, #tpu.memory_space<vmem>>, vector<16x128xf32>
    %35 = vector.broadcast %24 : vector<16x1xf32> to vector<16x128xf32>
    %36 = arith.mulf %35, %34 : vector<16x128xf32>
    %37 = arith.truncf %27 : vector<16x16xf32> to vector<16x16xbf16>
    %cst_17 = arith.constant dense<0.000000e+00> : vector<16x128xf32>
    %38 = tpu.matmul %37, %5, %cst_17 {dimension_numbers = #tpu.dot_dimension_numbers<[1], [0], [0], [1], [0, 0, 1, 1], [], []>} : vector<16x16xbf16>, vector<16x128xbf16>, vector<16x128xf32> -> vector<16x128xf32>
    %39 = arith.addf %36, %38 : vector<16x128xf32>
    %c0_18 = arith.constant 0 : index
    %c0_19 = arith.constant 0 : index
    %40 = vector.load %arg12[%c0_18, %c0_19] : memref<16x128xf32, #tpu.memory_space<vmem>>, vector<16x128xf32>
    tpu.vector_store %arg12[%c0_18, %c0_19], %39 {strides = array<i32>} : memref<16x128xf32, #tpu.memory_space<vmem>>, vector<16x128xf32>,
    %c0_20 = arith.constant 0 : index
    %c0_21 = arith.constant 0 : index
    %41 = vector.load %arg10[%c0_20, %c0_21] : memref<16x1xf32, #tpu.memory_space<vmem>>, vector<16x1xf32>
    tpu.vector_store %arg10[%c0_20, %c0_21], %21 {strides = array<i32>} : memref<16x1xf32, #tpu.memory_space<vmem>>, vector<16x1xf32>,
    %c3_i32 = arith.constant 3 : i32
    %42 = arith.cmpi eq, %arg1, %c3_i32 : i32
    %43 = arith.extui %42 : i1 to i32
    %c0_i32_22 = arith.constant 0 : i32
    %44 = arith.cmpi ne, %43, %c0_i32_22 : i32
    scf.if %44 {
      %c0_23 = arith.constant 0 : index
      %c0_24 = arith.constant 0 : index
      %45 = vector.load %arg12[%c0_23, %c0_24] : memref<16x128xf32, #tpu.memory_space<vmem>>, vector<16x128xf32>
      %c0_25 = arith.constant 0 : index
      %c0_26 = arith.constant 0 : index
      %46 = vector.load %arg11[%c0_25, %c0_26] : memref<16x1xf32, #tpu.memory_space<vmem>>, vector<16x1xf32>
      %47 = tpu.reciprocal %46 {approx = true} : vector<16x1xf32> -> vector<16x1xf32>
      %48 = vector.broadcast %47 : vector<16x1xf32> to vector<16x128xf32>
      %49 = arith.mulf %45, %48 : vector<16x128xf32>
      %cst_27 = arith.constant dense<0.000000e+00> : vector<16xf32>
      %50 = vector.multi_reduction <add>, %49, %cst_27 [1] : vector<16x128xf32> to vector<16xf32>
      %51 = vector.shape_cast %50 : vector<16xf32> to vector<16x1xf32>
      %cst_28 = arith.constant 3.125000e-02 : f32
      %52 = vector.broadcast %cst_28 : f32 to vector<16x1xf32>
      %53 = arith.mulf %51, %52 : vector<16x1xf32>
      %54 = arith.mulf %49, %49 : vector<16x128xf32>
      %cst_29 = arith.constant dense<0.000000e+00> : vector<16xf32>
      %55 = vector.multi_reduction <add>, %54, %cst_29 [1] : vector<16x128xf32> to vector<16xf32>
      %56 = vector.shape_cast %55 : vector<16xf32> to vector<16x1xf32>
      %cst_30 = arith.constant 3.125000e-02 : f32
      %57 = vector.broadcast %cst_30 : f32 to vector<16x1xf32>
      %58 = arith.mulf %56, %57 : vector<16x1xf32>
      %59 = arith.mulf %53, %53 : vector<16x1xf32>
      %60 = arith.subf %58, %59 : vector<16x1xf32>
      %cst_31 = arith.constant 9.99999974E-6 : f32
      %61 = vector.broadcast %cst_31 : f32 to vector<16x1xf32>
      %62 = arith.addf %60, %61 : vector<16x1xf32>
      %63 = math.rsqrt %62 : vector<16x1xf32>
      %64 = vector.broadcast %53 : vector<16x1xf32> to vector<16x128xf32>
      %65 = arith.subf %49, %64 : vector<16x128xf32>
      %66 = vector.broadcast %63 : vector<16x1xf32> to vector<16x128xf32>
      %67 = arith.mulf %65, %66 : vector<16x128xf32>
      %c0_32 = arith.constant 0 : index
      %c0_33 = arith.constant 0 : index
      %68 = vector.load %arg6[%c0_32, %c0_33] : memref<1x128xf32, #tpu.memory_space<vmem>>, vector<1x128xf32>
      %69 = vector.broadcast %68 : vector<1x128xf32> to vector<16x128xf32>
      %70 = arith.mulf %67, %69 : vector<16x128xf32>
      %c0_34 = arith.constant 0 : index
      %c0_35 = arith.constant 0 : index
      %71 = vector.load %arg7[%c0_34, %c0_35] : memref<1x128xf32, #tpu.memory_space<vmem>>, vector<1x128xf32>
      %72 = vector.broadcast %71 : vector<1x128xf32> to vector<16x128xf32>
      %73 = arith.addf %70, %72 : vector<16x128xf32>
      %c0_36 = arith.constant 0 : index
      %c0_37 = arith.constant 0 : index
      %74 = vector.load %arg8[%c0_36, %c0_37] : memref<16x128xf32, #tpu.memory_space<vmem>>, vector<16x128xf32>
      tpu.vector_store %arg8[%c0_36, %c0_37], %73 {strides = array<i32>} : memref<16x128xf32, #tpu.memory_space<vmem>>, vector<16x128xf32>,
    } else {
    }
    return
  }
  func.func @transform_0(%arg0: i32, %arg1: i32) -> (i32, i32) {
    %c0_i32 = arith.constant 0 : i32
    %c0_i32_0 = arith.constant 0 : i32
    return %arg0, %c0_i32 : i32, i32
  }
  func.func @transform_1(%arg0: i32, %arg1: i32) -> (i32, i32) {
    %c0_i32 = arith.constant 0 : i32
    %c0_i32_0 = arith.constant 0 : i32
    %c0_i32_1 = arith.constant 0 : i32
    return %c0_i32, %c0_i32_0 : i32, i32
  }
  func.func @transform_2(%arg0: i32, %arg1: i32) -> (i32, i32) {
    %c0_i32 = arith.constant 0 : i32
    %c0_i32_0 = arith.constant 0 : i32
    %c0_i32_1 = arith.constant 0 : i32
    return %c0_i32, %c0_i32_0 : i32, i32
  }
  func.func @transform_3(%arg0: i32, %arg1: i32) -> (i32, i32) {
    %c0_i32 = arith.constant 0 : i32
    %c0_i32_0 = arith.constant 0 : i32
    return %arg1, %c0_i32 : i32, i32
  }
  func.func @transform_4(%arg0: i32, %arg1: i32) -> (i32, i32) {
    %c0_i32 = arith.constant 0 : i32
    %c0_i32_0 = arith.constant 0 : i32
    %c0_i32_1 = arith.constant 0 : i32
    return %c0_i32, %c0_i32_0 : i32, i32
  }
  func.func @transform_5(%arg0: i32, %arg1: i32) -> (i32, i32) {
    %c0_i32 = arith.constant 0 : i32
    %c0_i32_0 = arith.constant 0 : i32
    %c0_i32_1 = arith.constant 0 : i32
    return %c0_i32, %c0_i32_0 : i32, i32
  }
  func.func @transform_6(%arg0: i32, %arg1: i32) -> (i32, i32) {
    %c0_i32 = arith.constant 0 : i32
    %c0_i32_0 = arith.constant 0 : i32
    return %arg0, %c0_i32 : i32, i32
  }
}

</mosaic_0001>

<bundles_post_ra>
// kernel: raa_layer_forward.6
= control target key start
LH: loop header
LB: loop body
LE: loop exit
PB: predicated region body
PF: predicated region fallthrough
CT: control target
= control target key end

     0   :  { %s384_s12 = smov 0   ;;  %s410_s0 = inlined_call_operand.vmem [shape: f32[64,16], index: 0, kind: input, shape index: {}]   ;;  %s411_s1 = inlined_call_operand.vmem [shape: bf16[16,256], index: 1, kind: input, shape index: {}]   ;;  %s412_s2 = inlined_call_operand.vmem [shape: f32[1,256], index: 2, kind: input, shape index: {}]   ;;  %s413_s3 = inlined_call_operand.vmem [shape: bf16[64,256], index: 3, kind: output, shape index: {}]  }
   0x1 LB: > { %s323_s13 = sadd.s32 4294967295, %s361_s12   ;;  %p327_p0 = scmp.ge.s32.totalorder %s361_s12, 1  ;;  %s361_s12 = sphi %s384_s12, %s13_s12  }
   0x2   : > { %p138_p1 = scmp.lt.s32.totalorder %s361_s12, 5 }
   0x4   : > { %p139_p2 = pnand %p327_p0, %p138_p1 }
   0x5   : > { %v352_v0 = vld [vmem:[%s411_s1 + $0x4] ss:$8 sps:$4 sm:$0xff] (!%p139_p2)   ;;  %s328_s16 = sshll.u32 (!%p139_p2), %s323_s13, 1  ;;  %v354_v1 = vld [vmem:[%s411_s1] ss:$8 sps:$4 sm:$0xff] (!%p139_p2)   ;;  %v363_v2 = vmov (!%p139_p2), 0   ;;  %v184_v6 = vlaneseq (!%p139_p2) }
   0x6   : > { %142 = sbr.rel (%p139_p2) target bundleno = 239 (0xef), region = 32  ;;  %240 = vmatprep.mubr.bf16.mxu0 (!%p139_p2), %v363_v2  ;;  %p164_p3 = scmp.lt.s32.totalorder (!%p139_p2), %s328_s16, 7  ;;  %208 = vmatprep.subr.bf16.mxu0 (!%p139_p2), %v352_v0  ;;  %vm204_vm0 = vcmask (!%p139_p2), 130048   ;;  %v182_v9 = vld [vmem:[%s412_s2] sm:$0x3] (!%p139_p2) }
   0x7   : > { %209 = vmatpush1.bf16.msra.mxu0 (!%p139_p2), %v354_v1  ;;  %v185_v7 = vshrl.u32 (!%p139_p2), %v184_v6, 7 }
   0x9   : > { %v186_v8 = vsub.s32 (!%p139_p2), 0, %v185_v7  ;;  %v190_v10 = vsub.s32 (!%p139_p2), 1, %v185_v7 }
   0xb   : > { %v187_v11 = vrot.slane (!%p139_p2), %v182_v9, %v186_v8  ;;  %v191_v12 = vrot.slane (!%p139_p2), %v182_v9, %v190_v10 }
   0xd   : > { %s415_s16 = smov (!%p164_p3, %s328_s16), 7 }
   0xe   : > { %s329_s19 = sshll.u32 %s415_s16, 3 }
   0xf   : > { %s167_s22 = scalar_lea.vmem %s410_s0, %s329_s19  ;;  %s174_s27 = scalar_lea.vmem %s413_s3, %s329_s19 }
  0x10   : > { %v177_v3 = vld [vmem:[%s167_s22] sm:$0xff]  ;;  %v178_v4 = vld [vmem:[%s167_s22 + $0x8] sm:$0xff] }
  0x11   : > { %v179_v5 = vpack.c.bf16 %v178_v4, %v177_v3 }
  0x13   : > { %335 = vmatmul.mubr.msk.bf16.vlgmr.msra.gmra.mrb[0].mxu0 %vm204_vm0, %v179_v5 }
  0xe6   : > { %v242_v13 = vpop.f32.mrb[0].mxu0 }
  0xe7   : > { %v243_v14 = vadd.f32 %v242_v13, %v187_v11  ;;  %v244_v15 = vpop.f32.mrb[1].mxu0 }
  0xe8   : > { %v245_v16 = vadd.f32 %v244_v15, %v191_v12  ;;  %v246_v17 = vpop.f32.mrb[2].mxu0 }
  0xe9   : > { %v247_v18 = vadd.f32 %v246_v17, %v187_v11  ;;  %v248_v19 = vpop.f32.mrb[3].mxu0 }
  0xea   : > { %v341_v20 = vpack.c.bf16 %v245_v16, %v243_v14  ;;  %v249_v21 = vadd.f32 %v248_v19, %v191_v12 }
  0xec   : > { %263 = vst [vmem:[%s174_s27] sm:$0xff] %v341_v20  ;;  %v342_v22 = vpack.c.bf16 %v249_v21, %v247_v18 }
  0xee   : > { %264 = vst [vmem:[%s174_s27 + $0x8] sm:$0xff] %v342_v22 }
  0xef PF: > { %s13_s12 = sadd.s32 1, %s361_s12  }
  0xf0   : > { %p10_p4 = scmp.ge.s32.totalorder %s13_s12, 6  }
  0xf2   :  { %12 = sbr.rel (!%p10_p4) target bundleno = 1 (0x1), region = 62 }

// kernel: raa_layer_forward.4
= control target key start
LH: loop header
LB: loop body
LE: loop exit
PB: predicated region body
PF: predicated region fallthrough
CT: control target
= control target key end

     0   :  { %s385_s12 = smov 0   ;;  %s408_s0 = inlined_call_operand.vmem [shape: f32[32,8], index: 0, kind: input, shape index: {}]   ;;  %s409_s1 = inlined_call_operand.vmem [shape: bf16[8,256], index: 1, kind: input, shape index: {}]   ;;  %s410_s2 = inlined_call_operand.vmem [shape: f32[1,256], index: 2, kind: input, shape index: {}]   ;;  %s411_s3 = inlined_call_operand.vmem [shape: bf16[32,256], index: 3, kind: output, shape index: {}]  }
   0x1 LB: > { %s324_s13 = sadd.s32 4294967295, %s362_s12   ;;  %p328_p0 = scmp.ge.s32.totalorder %s362_s12, 1  ;;  %s362_s12 = sphi %s385_s12, %s13_s12  }
   0x2   : > { %p138_p1 = scmp.lt.s32.totalorder %s362_s12, 3 }
   0x4   : > { %p139_p2 = pnand %p328_p0, %p138_p1 }
   0x5   : > { %v180_v0 = vld [vmem:[%s409_s1] sm:$0xff] (!%p139_p2)  ;;  %vm202_vm0 = vcmask (!%p139_p2), 1043456   ;;  %s329_s16 = sshll.u32 (!%p139_p2), %s324_s13, 1  ;;  %v364_v3 = vmov (!%p139_p2), 0   ;;  %vm198_vm1 = vcmask (!%p139_p2), 64512   ;;  %v183_v8 = vlaneseq (!%p139_p2) }
   0x6   : > { %142 = sbr.rel (%p139_p2) target bundleno = 239 (0xef), region = 32  ;;  %v335_v1 = vcombine.high (!%p139_p2), %v180_v0, %v180_v0  ;;  %v334_v2 = vcombine.low (!%p139_p2), %v180_v0, %v180_v0  ;;  %241 = vmatprep.mubr.bf16.mxu0 (!%p139_p2), %v364_v3  ;;  %p164_p3 = scmp.lt.s32.totalorder (!%p139_p2), %s329_s16, 3  ;;  %v181_v11 = vld [vmem:[%s410_s2] sm:$0x3] (!%p139_p2) }
   0x7   : > { %v184_v9 = vshrl.u32 (!%p139_p2), %v183_v8, 7 }
   0x8   : > { %336 = vmatprep.subr.msk.bf16.mxu0 (!%p139_p2), %vm202_vm0, %v335_v1  ;;  %v204_v4 = vsel (!%p139_p2), %vm202_vm0, %v334_v2, 0 }
   0x9   : > { %210 = vmatpush1.bf16.msra.mxu0 (!%p139_p2), %v204_v4  ;;  %v185_v10 = vsub.s32 (!%p139_p2), 0, %v184_v9  ;;  %v189_v12 = vsub.s32 (!%p139_p2), 1, %v184_v9 }
   0xb   : > { %v186_v13 = vrot.slane (!%p139_p2), %v181_v11, %v185_v10  ;;  %v190_v14 = vrot.slane (!%p139_p2), %v181_v11, %v189_v12 }
   0xd   : > { %s413_s16 = smov (!%p164_p3, %s329_s16), 3 }
   0xe   : > { %s330_s17 = sshll.u32 %s413_s16, 3 }
   0xf   : > { %s167_s20 = scalar_lea.vmem %s408_s0, %s330_s17  ;;  %s174_s25 = scalar_lea.vmem %s411_s3, %s330_s17 }
  0x10   : > { %v177_v5 = vld [vmem:[%s167_s20] sm:$0xff]  ;;  %v178_v6 = vld [vmem:[%s167_s20 + $0x8] sm:$0xff] }
  0x11   : > { %v179_v7 = vpack.c.bf16 %v178_v6, %v177_v5 }
  0x13   : > { %337 = vmatmul.mubr.msk.bf16.vlgmr.msra.gmra.mrb[0].mxu0 %vm198_vm1, %v179_v7 }
  0xe6   : > { %v243_v15 = vpop.f32.mrb[0].mxu0 }
  0xe7   : > { %v244_v16 = vadd.f32 %v243_v15, %v186_v13  ;;  %v245_v17 = vpop.f32.mrb[1].mxu0 }
  0xe8   : > { %v246_v18 = vadd.f32 %v245_v17, %v190_v14  ;;  %v247_v19 = vpop.f32.mrb[2].mxu0 }
  0xe9   : > { %v248_v20 = vadd.f32 %v247_v19, %v186_v13  ;;  %v249_v21 = vpop.f32.mrb[3].mxu0 }
  0xea   : > { %v343_v22 = vpack.c.bf16 %v246_v18, %v244_v16  ;;  %v250_v23 = vadd.f32 %v249_v21, %v190_v14 }
  0xec   : > { %264 = vst [vmem:[%s174_s25] sm:$0xff] %v343_v22  ;;  %v344_v24 = vpack.c.bf16 %v250_v23, %v248_v20 }
  0xee   : > { %265 = vst [vmem:[%s174_s25 + $0x8] sm:$0xff] %v344_v24 }
  0xef PF: > { %s13_s12 = sadd.s32 1, %s362_s12  }
  0xf0   : > { %p10_p4 = scmp.ge.s32.totalorder %s13_s12, 4  }
  0xf2   :  { %12 = sbr.rel (!%p10_p4) target bundleno = 1 (0x1), region = 62 }

// kernel: raa_layer_forward.7
= control target key start
LH: loop header
LB: loop body
LE: loop exit
PB: predicated region body
PF: predicated region fallthrough
CT: control target
= control target key end

     0   :  { %11 = vsyncpa [#allocation7], 0  ;;  %s1180_s0 = inlined_call_operand.vmem [shape: f32[32,8], index: 0, kind: input, shape index: {}]   ;;  %s1181_s1 = inlined_call_operand.vmem [shape: bf16[8,128], index: 1, kind: input, shape index: {}]   ;;  %s1182_s2 = inlined_call_operand.vmem [shape: f32[1,128], index: 2, kind: input, shape index: {}]   ;;  %s1183_s3 = inlined_call_operand.vmem [shape: bf16[64,256], index: 3, kind: input, shape index: {}]   ;;  %s1184_s4 = inlined_call_operand.vmem [shape: f32[1,128], index: 4, kind: input, shape index: {}]   ;;  %s1185_s5 = inlined_call_operand.vmem [shape: f32[1,128], index: 5, kind: input, shape index: {}]   ;;  %s1186_s6 = inlined_call_operand.hbm [shape: f32[32,128], index: 6, kind: output, shape index: {}]  }
   0x1   :  { %13 = vsyncpa [#allocation7 + $0x1], 0  ;;  %s1004_s21 = smov 0   ;;  %s1006_s22 = smov 0  }
   0x2   :  { %s1008_s23 = smov 0   ;;  %s1010_s24 = smov 0  }
   0x3   :  { %s1012_s25 = smov 0   ;;  %s1014_s26 = smov 0  }
   0x4   :  { %s1016_s27 = smov 0   ;;  %s1018_s28 = smov 0  }
   0x5 LB: > { %1190 = sst [smem:[#allocation9_spill]] %s953_s27  ;;  %s710_s29 = sadd.s32 4294967295, %s957_s28   ;;  %s957_s28 = sphi %s1018_s28, %s19_s28   ;;  %s953_s27 = sphi %s1016_s27, %s1198_s27   ;;  %s949_s26 = sphi %s1014_s26, %s1203_s26   ;;  %s945_s25 = sphi %s1012_s25, %s1196_s25   ;;  %s941_s24 = sphi %s1010_s24, %s1202_s24   ;;  %s937_s23 = sphi %s1008_s23, %s1201_s23   ;;  %s933_s22 = sphi %s1006_s22, %s1200_s22   ;;  %s929_s21 = sphi %s1004_s21, %s1199_s21  }
   0x6   : > { %s711_s30 = sadd.s32 4294967294, %s957_s28   ;;  %s28_s7 = sadd.s32 1, %s949_s26 }
   0x7   : > { %p29_p0 = scmp.ge.s32.totalorder %s28_s7, 4  ;;  %s31_s8 = sadd.s32 1, %s953_s27 }
   0x8   : > { %p184_p1 = scmp.ne.s32.totalorder %s937_s23, %s933_s22  ;;  %p185_p2 = scmp.eq.s32.totalorder %s710_s29, 7 }
   0x9   : > { %s1205_s7 = smov (%p29_p0, %s28_s7), 0  ;;  %s1207_s8 = smov (!%p29_p0, %s31_s8), %s953_s27 }
   0xa   : > { %1191 = sst [smem:[#allocation10_spill]] %s1205_s7  ;;  %p1053_p3 = por %p185_p2, %p184_p1 }
   0xb   : > { %p190_p4 = scmp.ne.s32.totalorder %s933_s22, %s929_s21  ;;  %p33_p5 = scmp.ge.s32.totalorder %s1207_s8, 2 }
   0xc   : > { %p191_p6 = scmp.eq.s32.totalorder %s711_s30, 7  ;;  %p714_p7 = scmp.ge.s32.totalorder %s957_s28, 1 }
   0xd   : > { %p240_p8 = scmp.lt.s32.totalorder %s957_s28, 9  ;;  %s1209_s8 = smov (%p33_p5, %s1207_s8), 0 }
   0xe   : > { %1193 = sst [smem:[#allocation11_spill]] %s1209_s8  ;;  %p1063_p9 = por %p191_p6, %p190_p4 }
   0xf   : > { %p241_p10 = pnand %p714_p7, %p240_p8  ;;  %s171_s11 = ssub.s32 %s953_s27, %s1209_s8 }
  0x10   : > { %s174_s12 = sadd.s32 1, %s937_s23  ;;  %p172_p11 = scmp.eq.s32.totalorder %s171_s11, 0 }
  0x11   : > { %244 = sbr.rel (%p241_p10) target bundleno = 1256 (0x4e8), region = 44  ;;  %s1188_s14 = sand.u32 (!%p241_p10), 1, %s933_s22  }
  0x12   : > { %s1071_s13 = scalar_select %p172_p11, %s937_s23, %s174_s12  }
  0x13   : > { %s716_s15 = sshll.u32 (!%p241_p10), %s945_s25, 1  ;;  %s715_s16 = sshll.u32 (!%p241_p10), %s1188_s14, 4 }
  0x14   : > { %p277_p12 = scmp.lt.s32.totalorder (!%p241_p10), %s716_s15, 3  ;;  %s718_s17 = sshll.u32 (!%p241_p10), %s941_s24, 1 }
  0x15   : > { %p283_p13 = scmp.lt.s32.totalorder (!%p241_p10), %s718_s17, 7  ;;  %s1086_s7 = scalar_lea.vmem (!%p241_p10), [#allocation6], %s715_s16 }
  0x16   : > { %p721_p0 = scmp.ne.s32.totalorder (!%p241_p10), %s941_s24, 0 }
  0x18   : > { %s1211_s15 = smov (!%p277_p12, %s716_s15), 3  ;;  %s1213_s17 = smov (!%p283_p13, %s718_s17), 7 }
  0x19   : > { %s717_s18 = sshll.u32 %s1211_s15, 3  ;;  %s736_s30 = sshll.u32 %s1213_s17, 3  ;;  %vm359_vm0 = vcmask (!%p721_p0), 7168   ;;  %v298_v0 = vld [vmem:[%s1181_s1] sm:$0xf] (!%p721_p0)  ;;  %vm310_vm1 = vcmask (!%p721_p0), 1043456  }
  0x1a   : > { %s280_s29 = scalar_lea.vmem %s1180_s0, %s717_s18  ;;  %s1084_s8 = scalar_lea.vmem %s1183_s3, %s736_s30  ;;  %v959_v1 = vmov (!%p721_p0), 0.0   ;;  %v960_v2 = vmov (!%p721_p0), -inf   ;;  %v312_v3 = vsel (!%p721_p0), %vm310_vm1, %v298_v0, 0  ;;  %vm961_vm2 = vmmov (!%p721_p0), 0   ;;  %v722_v7 = vld [vmem:[%s1182_s2] ss:$0 sm:$0xff] (!%p721_p0) }
  0x1b   : > { %294 = sbr.rel (%p721_p0) target bundleno = 252 (0xfc), region = 48  ;;  %744 = vmatprep.subr.bf16.mxu0 (!%p721_p0), %v959_v1  ;;  %360 = vst.msk [vmem:[#allocation3] sm:$0xff] (!%p721_p0), %vm359_vm0, %v960_v2  ;;  %361 = vst.msk [vmem:[#allocation3 + $0x8] sm:$0xff] (!%p721_p0), %vm359_vm0, %v960_v2  ;;  %v295_v4 = vld [vmem:[%s280_s29] sm:$0xff] (!%p721_p0)  ;;  %v296_v5 = vld [vmem:[%s280_s29 + $0x8] sm:$0xff] (!%p721_p0)  ;;  %746 = vmatprep.mubr.msk.bf16.mxu0 (!%p721_p0), %vm961_vm2, %v959_v1  ;;  %vm306_vm3 = vcmask (!%p721_p0), 64512  }
  0x1c   : > { %362 = vst.msk [vmem:[#allocation4] sm:$0xff] (!%p721_p0), %vm359_vm0, %v959_v1  ;;  %363 = vst.msk [vmem:[#allocation4 + $0x8] sm:$0xff] (!%p721_p0), %vm359_vm0, %v959_v1  ;;  %745 = vmatpush3.bf16.msra.mxu0 (!%p721_p0), %v312_v3  ;;  %v297_v6 = vpack.c.bf16 (!%p721_p0), %v296_v5, %v295_v4 }
  0x1d   : > { %364 = vst [vmem:[#allocation5] sm:$0xff] (!%p721_p0), %v959_v1  ;;  %365 = vst [vmem:[#allocation5 + $0x8] sm:$0xff] (!%p721_p0), %v959_v1 }
  0x1f   : > { %747 = vmatmul.mubr.msk.bf16.vlgmr.msra.gmra.mrb[0].mxu0 (!%p721_p0), %vm306_vm3, %v297_v6 }
  0xf2   : > { %v348_v8 = vpop.f32.mrb[0].mxu0 }
  0xf3   : > { %v349_v9 = vadd.f32 %v722_v7, %v348_v8  ;;  %v748_v10 = vpop.f32.mrb[1].mxu0 }
  0xf4   : > { %v351_v11 = vpop.f32.mrb[2].mxu0 }
  0xf5   : > { %v352_v12 = vadd.f32 %v722_v7, %v351_v11  ;;  %v749_v13 = vpop.f32.mrb[3].mxu0  ;;  %v355_v14 = vmul.f32 0.17677669, %v349_v9 }
  0xf7   : > { %v356_v15 = vmul.f32 0.17677669, %v352_v12 }
  0xf9   : > { %v357_v16 = vpack.c.bf16 %v356_v15, %v355_v14 }
  0xfb   : > { %358 = vst [vmem:[#allocation2] sm:$0xff] %v357_v16 }
  0xfc PF: > { %v844_v17 = vld [vmem:[%s1084_s8] ss:$8 sps:$4 sm:$0xff]   ;;  %v962_v18 = vmov 0.0   ;;  %vm963_vm4 = vmmov 0   ;;  %v417_v20 = vlaneseq  ;;  %s725_s15 = sshll.u32 %s941_s24, 4  ;;  %vm428_vm6 = vcmask 130048  }
  0xfd   : > { %750 = vmatprep.subr.bf16.mxu0 %v962_v18  ;;  %752 = vmatprep.mubr.msk.bf16.mxu0 %vm963_vm4, %v962_v18  ;;  %v419_v22 = vstv %s725_s15  ;;  %v964_v32 = vmov 0   ;;  %v426_v33 = vld [vmem:[#allocation3] sm:$0xff]  ;;  %vm471_vm7 = vcmask 7168   ;;  %v427_v36 = vld [vmem:[#allocation3 + $0x8] sm:$0xff]  ;;  %v366_v41 = vld [vmem:[%s1084_s8] sm:$0xff]  ;;  %p728_p1 = scmp.ne.s32.totalorder %s941_s24, 3 }
  0xfe   : > { %751 = vmatpush3.bf16.xpose.msra.mxu0 %v844_v17  ;;  %756 = vmatprep.subr.bf16.mxu1 %v962_v18  ;;  %v418_v21 = vand.u32 127, %v417_v20  ;;  %v367_v42 = vld [vmem:[%s1084_s8 + $0x8] sm:$0xff]  ;;  %v459_v59 = vld [vmem:[#allocation4] sm:$0xff]  ;;  %v460_v62 = vld [vmem:[#allocation4 + $0x8] sm:$0xff]  ;;  %v965_v17 = vmov (!%p728_p1), 0  }
  0xff   : > { %758 = vmatprep.mubr.msk.bf16.mxu1 %vm963_vm4, %v962_v18  ;;  %842 = vset.pattern.permute.xlu1 %v964_v32  ;;  %v726_v43 = vcombine.high %v366_v41, %v367_v42  ;;  %v474_v3 = vld [vmem:[#allocation5] sm:$0xff]  ;;  %v475_v5 = vld [vmem:[#allocation5 + $0x8] sm:$0xff] }
 0x100   : > { %v420_v23 = vadd.s32 %v419_v22, %v418_v21  ;;  %843 = vset.pattern.permute.xlu0 %v964_v32 }
 0x101   : > { %757 = vmatpush3.bf16.msra.mxu1 %v726_v43 }
 0x102   : > { %v368_v19 = vld [vmem:[#allocation2] sm:$0xff]  ;;  %vm421_vm5 = vcmp.lt.s32.totalorder %v420_v23, 60 }
 0x105   : > { %753 = vmatmul.mubr.bf16.vlgmr.msra.gmra.mrb[0].mxu0 %v368_v19 }
 0x1d8   : > { %v409_v24 = vpop.f32.mrb[0].mxu0 }
 0x1d9   : > { %v424_v25 = vsel %vm421_vm5, %v409_v24, -1e+30  ;;  %v754_v26 = vpop.f32.mrb[1].mxu0 }
 0x1da   : > { %v412_v27 = vpop.f32.mrb[2].mxu0  ;;  %v429_v28 = vsel %vm428_vm6, %v424_v25, -inf }
 0x1db   : > { %v425_v29 = vsel %vm421_vm5, %v412_v27, -1e+30  ;;  %430 = vmax.xlane.f32.xlu0 %v429_v28  ;;  %v755_v30 = vpop.f32.mrb[3].mxu0 }
 0x1dc   : > { %v432_v31 = vsel %vm428_vm6, %v425_v29, -inf }
 0x1df   : > { %433 = vmax.xlane.f32.xlu0 %v432_v31 }
 0x268   : > { %v431_v34 = vpop.xlane.xlu0 %430 }
 0x269   : > { %v435_v35 = vmax.f32 %v426_v33, %v431_v34 }
 0x26b   : > { %v437_v37 = vsub.f32 %v426_v33, %v435_v35  ;;  %541 = vst.msk [vmem:[#allocation3] sm:$0xff] %vm471_vm7, %v435_v35  ;;  %445 = vperm.xlu1 %842, %v435_v35  }
 0x26c   : > { %v434_v38 = vpop.xlane.xlu0 %433 }
 0x26d   : > { %v436_v39 = vmax.f32 %v427_v36, %v434_v38  ;;  %v439_v56 = vmul.f32 1.442695, %v437_v37 }
 0x26f   : > { %v438_v40 = vsub.f32 %v427_v36, %v436_v39  ;;  %542 = vst.msk [vmem:[#allocation3 + $0x8] sm:$0xff] %vm471_vm7, %v436_v39  ;;  %450 = vperm.xlu1 %842, %v436_v39  }
 0x271   : > { %v441_v55 = vmul.f32 1.442695, %v438_v40 }
 0x2ea   : > { %v446_v44 = vpop.permute.xlu1 %445 }
 0x2eb   : > { %v453_v45 = vsub.f32 %v424_v25, %v446_v44  ;;  %v729_v44 = vld [vmem:[%s1184_s4] ss:$0 sm:$0xff] (!%p728_p1) }
 0x2ed   : > { %v455_v46 = vmul.f32 1.442695, %v453_v45 }
 0x2ee   : > { %v451_v47 = vpop.permute.xlu1 %450 }
 0x2ef   : > { %846 = vpow2.f32 %v455_v46  ;;  %v454_v48 = vsub.f32 %v425_v29, %v451_v47  ;;  %v730_v46 = vld [vmem:[%s1185_s5] ss:$0 sm:$0xff] (!%p728_p1) }
 0x2f1   : > { %v457_v49 = vmul.f32 1.442695, %v454_v48 }
 0x2f3   : > { %848 = vpow2.f32 %v457_v49 }
 0x2f4   : > { %850 = vpow2.f32 %v441_v55 }
 0x2f5   : > { %852 = vpow2.f32 %v439_v56 }
 0x2f9   : > { %v847_v50 = vpop.eup %846 }
 0x2fa   : > { %v463_v51 = vsel %vm428_vm6, %v847_v50, 0.0 }
 0x2fb   : > { %464 = vadd.xlane.f32.xlu0 %v463_v51 }
 0x2fd   : > { %v849_v52 = vpop.eup %848 }
 0x2fe   : > { %v466_v53 = vsel %vm428_vm6, %v849_v52, 0.0  ;;  %v488_v54 = vpack.c.bf16 %v849_v52, %v847_v50  ;;  %v851_v57 = vpop.eup %850 }
 0x2ff   : > { %467 = vadd.xlane.f32.xlu1 %v466_v53  ;;  %v853_v58 = vpop.eup %852  ;;  %v462_v0 = vmul.f32 %v851_v57, %v460_v62 }
 0x300   : > { %759 = vmatmul.mubr.msk.bf16.vlgmr.msra.gmra.mrb[0].mxu1 %vm428_vm6, %v488_v54  ;;  %v461_v60 = vmul.f32 %v853_v58, %v459_v59 }
 0x310   : > { %483 = vperm.xlu1 %842, %v851_v57  }
 0x311   : > { %478 = vperm.xlu0 %843, %v853_v58  }
 0x315   : > { %854 = vset.pattern.permute.xlu0 (!%p728_p1), %v965_v17 }
 0x388   : > { %v465_v61 = vpop.xlane.xlu0 %464 }
 0x389   : > { %v469_v63 = vadd.f32 %v465_v61, %v461_v60 }
 0x38b   : > { %472 = vst.msk [vmem:[#allocation4] sm:$0xff] %vm471_vm7, %v469_v63 }
 0x38c   : > { %v468_v1 = vpop.xlane.xlu1 %467 }
 0x38d   : > { %v470_v2 = vadd.f32 %v468_v1, %v462_v0 }
 0x38f   : > { %473 = vst.msk [vmem:[#allocation4 + $0x8] sm:$0xff] %vm471_vm7, %v470_v2 }
 0x390   : > { %v479_v4 = vpop.permute.xlu0 %478  ;;  %v484_v6 = vpop.permute.xlu1 %483 }
 0x391   : > { %v486_v7 = vmul.f32 %v479_v4, %v474_v3  ;;  %v487_v9 = vmul.f32 %v484_v6, %v475_v5 }
 0x392   : > { %v549_v15 = vld [vmem:[#allocation4] sm:$0xff] (!%p728_p1) }
 0x393   : > { %855 = vrcp.f32 (!%p728_p1), %v549_v15 }
 0x396   : > { %v550_v16 = vld [vmem:[#allocation4 + $0x8] sm:$0xff] (!%p728_p1) }
 0x397   : > { %857 = vrcp.f32 (!%p728_p1), %v550_v16 }
 0x39d   : > { %v856_v18 = vpop.eup (!%p728_p1), %855 }
 0x39e   : > { %555 = vperm.xlu0 (!%p728_p1), %854, %v856_v18  }
 0x3a1   : > { %v858_v19 = vpop.eup (!%p728_p1), %857 }
 0x3a2   : > { %560 = vperm.xlu0 (!%p728_p1), %854, %v858_v19  }
 0x3d2   : > { %546 = sbr.rel (%p728_p1) target bundleno = 1230 (0x4ce), region = 52 }
 0x3d3   : > { %v530_v8 = vpop.f32.mrb[0].mxu1 }
 0x3d4   : > { %v537_v10 = vadd.f32 %v530_v8, %v486_v7  ;;  %v760_v11 = vpop.f32.mrb[1].mxu1 }
 0x3d5   : > { %v533_v12 = vpop.f32.mrb[2].mxu1 }
 0x3d6   : > { %539 = vst [vmem:[#allocation5] sm:$0xff] %v537_v10  ;;  %v538_v13 = vadd.f32 %v533_v12, %v487_v9  ;;  %v761_v14 = vpop.f32.mrb[3].mxu1 }
 0x3d8   : > { %540 = vst [vmem:[#allocation5 + $0x8] sm:$0xff] %v538_v13 }
 0x3dd   : > { %v547_v20 = vld [vmem:[#allocation5] sm:$0xff] }
 0x3df   : > { %v548_v23 = vld [vmem:[#allocation5 + $0x8] sm:$0xff] }
 0x41d   : > { %v556_v21 = vpop.permute.xlu0 %555 }
 0x41e   : > { %v563_v22 = vmul.f32 %v556_v21, %v547_v20 }
 0x420   : > { %565 = vadd.xlane.f32.xlu1 %v563_v22  ;;  %v571_v24 = vmul.f32 %v563_v22, %v563_v22 }
 0x421   : > { %v561_v25 = vpop.permute.xlu0 %560 }
 0x422   : > { %v564_v26 = vmul.f32 %v561_v25, %v548_v23  ;;  %573 = vadd.xlane.f32.xlu0 %v571_v24 }
 0x424   : > { %567 = vadd.xlane.f32.xlu1 %v564_v26  ;;  %v572_v27 = vmul.f32 %v564_v26, %v564_v26 }
 0x428   : > { %575 = vadd.xlane.f32.xlu1 %v572_v27 }
 0x4ad   : > { %v566_v28 = vpop.xlane.xlu1 %565 }
 0x4ae   : > { %v569_v29 = vmul.f32 0.03125, %v566_v28 }
 0x4af   : > { %v574_v30 = vpop.xlane.xlu0 %573 }
 0x4b0   : > { %v579_v31 = vmul.f32 %v569_v29, %v569_v29  ;;  %v577_v32 = vmul.f32 0.03125, %v574_v30  ;;  %v587_v42 = vsub.f32 %v563_v22, %v569_v29 }
 0x4b1   : > { %v568_v33 = vpop.xlane.xlu1 %567 }
 0x4b2   : > { %v581_v34 = vsub.f32 %v577_v32, %v579_v31  ;;  %v570_v35 = vmul.f32 0.03125, %v568_v33 }
 0x4b4   : > { %v583_v36 = vadd.f32 1e-05, %v581_v34  ;;  %v580_v38 = vmul.f32 %v570_v35, %v570_v35  ;;  %v588_v49 = vsub.f32 %v564_v26, %v570_v35 }
 0x4b5   : > { %v576_v37 = vpop.xlane.xlu1 %575 }
 0x4b6   : > { %859 = vrsqrt.f32 %v583_v36  ;;  %v578_v39 = vmul.f32 0.03125, %v576_v37 }
 0x4b8   : > { %v582_v40 = vsub.f32 %v578_v39, %v580_v38 }
 0x4ba   : > { %v584_v41 = vadd.f32 1e-05, %v582_v40 }
 0x4bc   : > { %861 = vrsqrt.f32 %v584_v41 }
 0x4c0   : > { %v860_v43 = vpop.eup %859 }
 0x4c1   : > { %v589_v45 = vmul.f32 %v860_v43, %v587_v42 }
 0x4c3   : > { %v598_v47 = vmul.f32 %v729_v44, %v589_v45 }
 0x4c5   : > { %v607_v48 = vadd.f32 %v730_v46, %v598_v47 }
 0x4c6   : > { %v862_v50 = vpop.eup %861 }
 0x4c7   : > { %609 = vst [vmem:[%s1086_s7] sm:$0xff] %v607_v48  ;;  %v590_v51 = vmul.f32 %v862_v50, %v588_v49 }
 0x4c9   : > { %v599_v52 = vmul.f32 %v729_v44, %v590_v51 }
 0x4cb   : > { %v608_v53 = vadd.f32 %v730_v46, %v599_v52 }
 0x4cd   : > { %610 = vst [vmem:[%s1086_s7 + $0x8] sm:$0xff] %v608_v53 }
 0x4ce PF: > { %s737_s18 = sshll.u32 %s945_s25, 8  ;;  %s625_s30 = sshll.u32 %s1086_s7, 4  ;;  %s1124_s30 = int_to_ptr.vmem [resolvable:$true] %s625_s30 }
 0x4cf   : > { %s1121_s29 = scalar_lea.hbm %s1186_s6, %s737_s18  ;;  %s1195_s11 = sand.u32 1, %s933_s22  }
 0x4d0   : > { %s1128_s12 = scalar_lea.sflag [#allocation7], %s1195_s11  ;;  %s863_s27 = scalar_lea.vmem %s1124_s30, 256 }
 0x4d1   : > { %p864_p2 = scmp.ne.s32.totalorder %s1124_s30, %s863_s27  ;;  %s966_s25 = smov [#allocation6]  }
 0x4d2   : > { %s867_s14 = sshll.u32 %s966_s25, 4  ;;  %s868_s14 = int_to_ptr.vmem [resolvable:$false] %s867_s14 }
 0x4d3   : > { %p865_p4 = pnand %p864_p2, %p1053_p3  ;;  %s869_s15 = scalar_lea.vmem %s868_s14, 512 }
 0x4d4   : > { %p870_p6 = scmp.lt.s32.totalorder %s1124_s30, %s868_s14  ;;  %p871_p7 = scmp.lt.s32.totalorder %s869_s15, %s863_s27 }
 0x4d5   : > { %p866_p5 = pneg %p865_p4 }
 0x4d6   : > { %p872_p8 = por %p871_p7, %p870_p6 }
 0x4d8   : > { %p873_p10 = pnand %p872_p8, %p866_p5 }
 0x4da   : > { %876 = shalt.err (!%p873_p10)
}
 0x4db   : > { %s877_s7 = scalar_lea.hbm %s1121_s29, 256  ;;  %s881_s16 = scalar_lea.hbm %s1186_s6, 512 }
 0x4dc   : > { %p878_p11 = scmp.ne.s32.totalorder %s1121_s29, %s877_s7  ;;  %p882_p0 = scmp.lt.u32.totalorder %s1121_s29, %s1186_s6 }
 0x4dd   : > { %p883_p1 = scmp.lt.u32.totalorder %s881_s16, %s877_s7  ;;  %p885_p4 = scmp.lt.u32.totalorder %s877_s7, %s1121_s29 }
 0x4de   : > { %p879_p12 = pnand %p878_p11, %p1053_p3 }
 0x4df   : > { %p884_p2 = por %p883_p1, %p882_p0 }
 0x4e0   : > { %p880_p13 = pneg %p879_p12 }
 0x4e1   : > { %p886_p5 = por %p885_p4, %p884_p2 }
 0x4e3   : > { %p887_p6 = pnand %p886_p5, %p880_p13 }
 0x4e5   : > { %890 = shalt.err (!%p887_p6)
}
 0x4e6   : > { %s967_s19 = smov 128   ;;  %s968_s20 = smov 8  }
 0x4e7   : > { %762 = dma.vmem_to_hbm [thread:$0]  (%p1053_p3), %s1124_s30, 256, %s1121_s29, %s1128_s12, %s967_s19, %s967_s19, %s968_s20  }
 0x4e8 PF: > { %p768_p7 = scmp.ge.s32.totalorder %s957_s28, 2  ;;  %s640_s11 = sand.u32 1, %s929_s21  }
 0x4e9   : > { %s641_s27 = scalar_lea.sflag [#allocation7], %s640_s11 }
 0x4ea   : > { %p765_p8 = pnand %p768_p7, %p1063_p9 }
 0x4ec   : > { %924 = dma.done.wait (!%p765_p8), %s641_s27, 256  }
 0x4ed   : > { %926 = vsyncadd (!%p765_p8), %s641_s27, 4294967040  ;;  %s19_s28 = sadd.s32 1, %s957_s28   ;;  %s1196_s25 = sld [smem:[#allocation9_spill]] }
 0x4ee   : > { %p16_p10 = scmp.ge.s32.totalorder %s19_s28, 10   ;;  %s1197_s9 = sld [smem:[#allocation10_spill]] }
 0x4ef   : > { %s1198_s27 = sld [smem:[#allocation11_spill]]  ;;  %s1199_s21 = smov %s933_s22 }
 0x4f0   : > { %s1200_s22 = smov %s937_s23  ;;  %s1201_s23 = smov %s1071_s13 }
 0x4f1   : > { %s1202_s24 = smov %s949_s26  ;;  %18 = sbr.rel (!%p16_p10) target bundleno = 5 (0x5), region = 90 }
 0x4f4   : > { %s1203_s26 = smov %s1197_s9 }
 0x4f8   :  { %646 = vsyncpa [#allocation7], 1 }
 0x4f9   :  { %648 = vsyncpa [#allocation7 + $0x1], 1 }

// kernel: raa_layer_forward.5
= control target key start
LH: loop header
LB: loop body
LE: loop exit
PB: predicated region body
PF: predicated region fallthrough
CT: control target
= control target key end

     0   :  { %s1076_s21 = smov 0   ;;  %s1078_s22 = smov 0   ;;  %s1181_s0 = inlined_call_operand.vmem [shape: f32[64,16], index: 0, kind: input, shape index: {}]   ;;  %s1182_s1 = inlined_call_operand.vmem [shape: bf16[16,128], index: 1, kind: input, shape index: {}]   ;;  %s1183_s2 = inlined_call_operand.vmem [shape: f32[1,128], index: 2, kind: input, shape index: {}]   ;;  %s1184_s3 = inlined_call_operand.vmem [shape: bf16[32,256], index: 3, kind: input, shape index: {}]   ;;  %s1185_s4 = inlined_call_operand.vmem [shape: f32[1,128], index: 4, kind: input, shape index: {}]   ;;  %s1186_s5 = inlined_call_operand.vmem [shape: f32[1,128], index: 5, kind: input, shape index: {}]   ;;  %s1187_s6 = inlined_call_operand.vmem [shape: f32[64,128], index: 6, kind: output, shape index: {}]  }
   0x1   :  { %s1080_s23 = smov 0   ;;  %s1082_s24 = smov 0  }
   0x2   :  { %s1084_s25 = smov 0  }
   0x3 LB: > { %s25_s26 = sadd.s32 1, %s1027_s23  ;;  %s28_s27 = sadd.s32 1, %s1031_s24  ;;  %s1035_s25 = sphi %s1084_s25, %s16_s25   ;;  %s1031_s24 = sphi %s1082_s24, %s1191_s24   ;;  %s1027_s23 = sphi %s1080_s23, %s1190_s23   ;;  %s1023_s22 = sphi %s1078_s22, %s1189_s22   ;;  %s1019_s21 = sphi %s1076_s21, %s1188_s21  }
   0x4   : > { %p26_p0 = scmp.ge.s32.totalorder %s25_s26, 2  ;;  %p863_p1 = scmp.ge.s32.totalorder %s1035_s25, 1 }
   0x5   : > { %p237_p2 = scmp.lt.s32.totalorder %s1035_s25, 5 }
   0x6   : > { %s1193_s26 = smov (%p26_p0, %s25_s26), 0  ;;  %s1195_s27 = smov (!%p26_p0, %s28_s27), %s1031_s24 }
   0x7   : > { %p238_p3 = pnand %p863_p1, %p237_p2  ;;  %p30_p4 = scmp.ge.s32.totalorder %s1195_s27, 2 }
   0x8   : > { %s864_s28 = sshll.u32 (!%p238_p3), %s1023_s22, 2  ;;  %s866_s29 = sshll.u32 (!%p238_p3), %s1019_s21, 1 }
   0x9   : > { %s1197_s27 = smov (%p30_p4, %s1195_s27), 0  ;;  %241 = sbr.rel (%p238_p3) target bundleno = 1235 (0x4d3), region = 44 }
   0xa   : > { %p274_p5 = scmp.lt.s32.totalorder (!%p238_p3), %s864_s28, 7  ;;  %p280_p6 = scmp.lt.s32.totalorder (!%p238_p3), %s866_s29, 3 }
   0xb   : > { %p871_p7 = scmp.ne.s32.totalorder (!%p238_p3), %s1019_s21, 0 }
  0x10   : > { %s1199_s28 = smov (!%p274_p5, %s864_s28), 7  ;;  %s1201_s29 = smov (!%p280_p6, %s866_s29), 3 }
  0x11   : > { %s865_s30 = sshll.u32 %s1199_s28, 3  ;;  %s886_s10 = sshll.u32 %s1201_s29, 3  ;;  %v958_v0 = vld [vmem:[%s1182_s1] sm:$0xff] (!%p871_p7)   ;;  %vm318_vm0 = vcmask (!%p871_p7), 130048   ;;  %vm382_vm1 = vcmask (!%p871_p7), 7168   ;;  %v1037_v7 = vmov (!%p871_p7), -inf  }
  0x12   : > { %s277_s9 = scalar_lea.vmem %s1181_s0, %s865_s30  ;;  %s1115_s13 = scalar_lea.vmem %s1184_s3, %s886_s10  ;;  %896 = vmatprep.subr.bf16.mxu0 (!%p871_p7), %v958_v0  ;;  %383 = vst.msk [vmem:[#allocation3] sm:$0xff] (!%p871_p7), %vm382_vm1, %v1037_v7  ;;  %384 = vst.msk [vmem:[#allocation3 + $0x8] sm:$0xff] (!%p871_p7), %vm382_vm1, %v1037_v7  ;;  %v1038_v8 = vmov (!%p871_p7), 0.0   ;;  %v872_v9 = vld [vmem:[%s1183_s2] ss:$0 sm:$0xff] (!%p871_p7) }
  0x13   : > { %s1120_s16 = scalar_lea.vmem %s1187_s6, %s865_s30  ;;  %296 = sbr.rel (%p871_p7) target bundleno = 245 (0xf5), region = 48  ;;  %v297_v1 = vld [vmem:[%s277_s9] sm:$0xff] (!%p871_p7)  ;;  %v298_v2 = vld [vmem:[%s277_s9 + $0x8] sm:$0xff] (!%p871_p7)  ;;  %v299_v3 = vld [vmem:[%s277_s9 + $0x10] sm:$0xff] (!%p871_p7)  ;;  %897 = vmatpush3.bf16.msra.mxu0 (!%p871_p7), %v958_v0  ;;  %385 = vst.msk [vmem:[#allocation3 + $0x10] sm:$0xff] (!%p871_p7), %vm382_vm1, %v1037_v7 }
  0x14   : > { %v301_v4 = vpack.c.bf16 (!%p871_p7), %v298_v2, %v297_v1  ;;  %v300_v5 = vld [vmem:[%s277_s9 + $0x18] sm:$0xff] (!%p871_p7)  ;;  %386 = vst.msk [vmem:[#allocation3 + $0x18] sm:$0xff] (!%p871_p7), %vm382_vm1, %v1037_v7  ;;  %387 = vst.msk [vmem:[#allocation4] sm:$0xff] (!%p871_p7), %vm382_vm1, %v1038_v8 }
  0x15   : > { %v302_v6 = vpack.c.bf16 (!%p871_p7), %v300_v5, %v299_v3  ;;  %388 = vst.msk [vmem:[#allocation4 + $0x8] sm:$0xff] (!%p871_p7), %vm382_vm1, %v1038_v8  ;;  %389 = vst.msk [vmem:[#allocation4 + $0x10] sm:$0xff] (!%p871_p7), %vm382_vm1, %v1038_v8 }
  0x16   : > { %898 = vmatprep.mubr.msk.bf16.mxu0 (!%p871_p7), %vm318_vm0, %v301_v4  ;;  %390 = vst.msk [vmem:[#allocation4 + $0x18] sm:$0xff] (!%p871_p7), %vm382_vm1, %v1038_v8  ;;  %391 = vst [vmem:[#allocation5] sm:$0xff] (!%p871_p7), %v1038_v8 }
  0x17   : > { %899 = vmatmul.mubr.msk.bf16.vlgmr.msra.gmra.mrb[0].mxu0 (!%p871_p7), %vm318_vm0, %v302_v6  ;;  %392 = vst [vmem:[#allocation5 + $0x8] sm:$0xff] (!%p871_p7), %v1038_v8  ;;  %393 = vst [vmem:[#allocation5 + $0x10] sm:$0xff] (!%p871_p7), %v1038_v8 }
  0x18   : > { %394 = vst [vmem:[#allocation5 + $0x18] sm:$0xff] (!%p871_p7), %v1038_v8 }
  0xea   : > { %v900_v10 = vpop.f32.mrb[0].mxu0 }
  0xeb   : > { %v368_v11 = vadd.f32 %v900_v10, %v872_v9  ;;  %v359_v12 = vpop.f32.mrb[1].mxu0 }
  0xec   : > { %v360_v13 = vadd.f32 %v872_v9, %v359_v12  ;;  %v901_v14 = vpop.f32.mrb[2].mxu0 }
  0xed   : > { %v371_v15 = vadd.f32 %v901_v14, %v872_v9  ;;  %v362_v16 = vpop.f32.mrb[3].mxu0  ;;  %v376_v18 = vmul.f32 0.17677669, %v368_v11 }
  0xee   : > { %v363_v17 = vadd.f32 %v872_v9, %v362_v16  ;;  %v374_v20 = vmul.f32 0.17677669, %v360_v13 }
  0xef   : > { %v377_v19 = vmul.f32 0.17677669, %v371_v15 }
  0xf0   : > { %v375_v21 = vmul.f32 0.17677669, %v363_v17 }
  0xf1   : > { %v379_v22 = vpack.c.bf16 %v377_v19, %v376_v18 }
  0xf2   : > { %v378_v23 = vpack.c.bf16 %v375_v21, %v374_v20 }
  0xf3   : > { %381 = vst [vmem:[#allocation2 + $0x8] sm:$0xff] %v379_v22 }
  0xf4   : > { %380 = vst [vmem:[#allocation2] sm:$0xff] %v378_v23 }
  0xf5 PF: > { %v961_v24 = vld [vmem:[%s1115_s13] ss:$8 sps:$4 sm:$0xff]   ;;  %v455_v27 = vlaneseq  ;;  %s877_s22 = sshll.u32 %s1019_s21, 4  ;;  %vm470_vm3 = vcmask 130048   ;;  %v1039_v43 = vmov 0   ;;  %v466_v45 = vld [vmem:[#allocation3] sm:$0xff] }
  0xf6   : > { %902 = vmatprep.subr.bf16.mxu0 %v961_v24  ;;  %v457_v29 = vstv %s877_s22  ;;  %960 = vset.pattern.permute.xlu1 %v1039_v43  ;;  %v1135_v44 = vld [vmem:[#allocation3 + $0x10] sm:$0xff]  ;;  %vm555_vm4 = vcmask 7168   ;;  %v469_v50 = vld [vmem:[#allocation3 + $0x18] sm:$0xff]  ;;  %v467_v52 = vld [vmem:[#allocation3 + $0x8] sm:$0xff]  ;;  %p881_p8 = scmp.ne.s32.totalorder %s1019_s21, 1 }
  0xf7   : > { %903 = vmatpush3.bf16.xpose.msra.mxu0 %v961_v24  ;;  %v456_v28 = vand.u32 127, %v455_v27  ;;  %959 = vset.pattern.permute.xlu0 %v1039_v43  ;;  %v395_v62 = vld [vmem:[%s1115_s13] sm:$0xff]  ;;  %v396_v63 = vld [vmem:[%s1115_s13 + $0x8] sm:$0xff] }
  0xf8   : > { %v878_v0 = vcombine.high %v395_v62, %v396_v63 }
  0xf9   : > { %v458_v30 = vadd.s32 %v457_v29, %v456_v28 }
  0xfa   : > { %v398_v26 = vld [vmem:[#allocation2 + $0x8] sm:$0xff]  ;;  %908 = vmatprep.subr.bf16.mxu1 %v878_v0 }
  0xfb   : > { %v397_v25 = vld [vmem:[#allocation2] sm:$0xff]  ;;  %vm459_vm2 = vcmp.lt.s32.totalorder %v458_v30, 26  ;;  %909 = vmatpush3.bf16.msra.mxu1 %v878_v0 }
  0xfc   : > { %904 = vmatprep.mubr.bf16.mxu0 %v397_v25  ;;  %v533_v30 = vld [vmem:[#allocation4 + $0x10] sm:$0xff] }
  0xfe   : > { %905 = vmatmul.mubr.bf16.vlgmr.msra.gmra.mrb[0].mxu0 %v398_v26 }
 0x1d1   : > { %v906_v31 = vpop.f32.mrb[0].mxu0 }
 0x1d2   : > { %v464_v32 = vsel %vm459_vm2, %v906_v31, -1e+30  ;;  %v439_v33 = vpop.f32.mrb[1].mxu0 }
 0x1d3   : > { %v462_v34 = vsel %vm459_vm2, %v439_v33, -1e+30  ;;  %v907_v35 = vpop.f32.mrb[2].mxu0  ;;  %v477_v36 = vsel %vm470_vm3, %v464_v32, -inf  ;;  %v531_v33 = vld [vmem:[#allocation4] sm:$0xff] }
 0x1d4   : > { %v465_v37 = vsel %vm459_vm2, %v907_v35, -1e+30  ;;  %478 = vmax.xlane.f32.xlu1 %v477_v36  ;;  %v442_v38 = vpop.f32.mrb[3].mxu0  ;;  %v471_v39 = vsel %vm470_vm3, %v462_v34, -inf  ;;  %v532_v35 = vld [vmem:[#allocation4 + $0x8] sm:$0xff] }
 0x1d5   : > { %v463_v40 = vsel %vm459_vm2, %v442_v38, -1e+30  ;;  %472 = vmax.xlane.f32.xlu0 %v471_v39  ;;  %v480_v41 = vsel %vm470_vm3, %v465_v37, -inf }
 0x1d6   : > { %v474_v42 = vsel %vm470_vm3, %v463_v40, -inf }
 0x1d8   : > { %481 = vmax.xlane.f32.xlu1 %v480_v41  ;;  %v534_v41 = vld [vmem:[#allocation4 + $0x18] sm:$0xff] }
 0x1d9   : > { %475 = vmax.xlane.f32.xlu0 %v474_v42 }
 0x261   : > { %v479_v46 = vpop.xlane.xlu1 %478 }
 0x262   : > { %v485_v47 = vmax.f32 %v1135_v44, %v479_v46  ;;  %v473_v48 = vpop.xlane.xlu0 %472 }
 0x263   : > { %v483_v49 = vmax.f32 %v466_v45, %v473_v48  ;;  %v560_v48 = vld [vmem:[#allocation5] sm:$0xff] }
 0x264   : > { %v489_v51 = vsub.f32 %v1135_v44, %v485_v47  ;;  %659 = vst.msk [vmem:[#allocation3 + $0x10] sm:$0xff] %vm555_vm4, %v485_v47  ;;  %511 = vperm.xlu1 %960, %v485_v47   ;;  %v562_v47 = vld [vmem:[#allocation5 + $0x10] sm:$0xff] }
 0x265   : > { %v487_v53 = vsub.f32 %v466_v45, %v483_v49  ;;  %657 = vst.msk [vmem:[#allocation3] sm:$0xff] %vm555_vm4, %v483_v49  ;;  %v482_v54 = vpop.xlane.xlu1 %481  ;;  %501 = vperm.xlu0 %959, %v483_v49   ;;  %v563_v49 = vld [vmem:[#allocation5 + $0x18] sm:$0xff] }
 0x266   : > { %v486_v55 = vmax.f32 %v469_v50, %v482_v54  ;;  %v476_v56 = vpop.xlane.xlu0 %475  ;;  %v495_v23 = vmul.f32 1.442695, %v489_v51 }
 0x267   : > { %v491_v57 = vmul.f32 1.442695, %v487_v53  ;;  %v484_v58 = vmax.f32 %v467_v52, %v476_v56 }
 0x268   : > { %v490_v59 = vsub.f32 %v469_v50, %v486_v55  ;;  %660 = vst.msk [vmem:[#allocation3 + $0x18] sm:$0xff] %vm555_vm4, %v486_v55 }
 0x269   : > { %963 = vpow2.f32 %v491_v57  ;;  %v488_v60 = vsub.f32 %v467_v52, %v484_v58  ;;  %658 = vst.msk [vmem:[#allocation3 + $0x8] sm:$0xff] %vm555_vm4, %v484_v58  ;;  %506 = vperm.xlu1 %960, %v484_v58   ;;  %v561_v52 = vld [vmem:[#allocation5 + $0x8] sm:$0xff] }
 0x26a   : > { %v497_v25 = vmul.f32 1.442695, %v490_v59 }
 0x26b   : > { %v493_v24 = vmul.f32 1.442695, %v488_v60 }
 0x26d   : > { %516 = vperm.xlu1 %960, %v486_v55  }
 0x273   : > { %v964_v61 = vpop.eup %963 }
 0x274   : > { %566 = vperm.xlu1 %960, %v964_v61   ;;  %v535_v36 = vmul.f32 %v964_v61, %v531_v33 }
 0x2e3   : > { %v512_v1 = vpop.permute.xlu1 %511 }
 0x2e4   : > { %v521_v2 = vsub.f32 %v464_v32, %v512_v1  ;;  %v502_v3 = vpop.permute.xlu0 %501 }
 0x2e5   : > { %v519_v4 = vsub.f32 %v462_v34, %v502_v3 }
 0x2e6   : > { %v527_v5 = vmul.f32 1.442695, %v521_v2 }
 0x2e7   : > { %v523_v6 = vmul.f32 1.442695, %v519_v4  ;;  %v1040_v4 = vmov (!%p881_p8), 0  }
 0x2e8   : > { %965 = vpow2.f32 %v527_v5  ;;  %v507_v7 = vpop.permute.xlu1 %506 }
 0x2e9   : > { %v520_v8 = vsub.f32 %v463_v40, %v507_v7  ;;  %967 = vpow2.f32 %v523_v6 }
 0x2eb   : > { %v525_v9 = vmul.f32 1.442695, %v520_v8 }
 0x2ec   : > { %v517_v10 = vpop.permute.xlu1 %516 }
 0x2ed   : > { %969 = vpow2.f32 %v525_v9  ;;  %v522_v11 = vsub.f32 %v465_v37, %v517_v10 }
 0x2ef   : > { %v529_v12 = vmul.f32 1.442695, %v522_v11 }
 0x2f1   : > { %971 = vpow2.f32 %v529_v12 }
 0x2f2   : > { %v966_v13 = vpop.eup %965  ;;  %973 = vpow2.f32 %v495_v23 }
 0x2f3   : > { %v545_v14 = vsel %vm470_vm3, %v966_v13, 0.0  ;;  %v968_v15 = vpop.eup %967  ;;  %975 = vpow2.f32 %v493_v24  ;;  %v567_v29 = vpop.permute.xlu1 %566 }
 0x2f4   : > { %546 = vadd.xlane.f32.xlu1 %v545_v14  ;;  %v539_v17 = vsel %vm470_vm3, %v968_v15, 0.0  ;;  %977 = vpow2.f32 %v497_v25  ;;  %v584_v54 = vmul.f32 %v567_v29, %v560_v48 }
 0x2f7   : > { %v970_v16 = vpop.eup %969 }
 0x2f8   : > { %540 = vadd.xlane.f32.xlu1 %v539_v17  ;;  %v542_v18 = vsel %vm470_vm3, %v970_v16, 0.0  ;;  %v588_v19 = vpack.c.bf16 %v970_v16, %v968_v15 }
 0x2f9   : > { %543 = vadd.xlane.f32.xlu0 %v542_v18 }
 0x2fa   : > { %910 = vmatprep.mubr.msk.bf16.mxu1 %vm470_vm3, %v588_v19 }
 0x2fb   : > { %v972_v20 = vpop.eup %971 }
 0x2fc   : > { %v548_v21 = vsel %vm470_vm3, %v972_v20, 0.0  ;;  %v589_v22 = vpack.c.bf16 %v972_v20, %v966_v13  ;;  %v974_v26 = vpop.eup %973 }
 0x2fd   : > { %549 = vadd.xlane.f32.xlu1 %v548_v21  ;;  %v976_v27 = vpop.eup %975  ;;  %v537_v31 = vmul.f32 %v974_v26, %v533_v30 }
 0x2fe   : > { %911 = vmatmul.mubr.msk.bf16.vlgmr.msra.gmra.mrb[0].mxu1 %vm470_vm3, %v589_v22  ;;  %v978_v28 = vpop.eup %977  ;;  %v536_v38 = vmul.f32 %v976_v27, %v532_v35 }
 0x2ff   : > { %v538_v43 = vmul.f32 %v978_v28, %v534_v41 }
 0x30e   : > { %576 = vperm.xlu1 %960, %v974_v26  }
 0x30f   : > { %571 = vperm.xlu0 %959, %v976_v27  }
 0x312   : > { %581 = vperm.xlu1 %960, %v978_v28  }
 0x313   : > { %979 = vset.pattern.permute.xlu0 (!%p881_p8), %v1040_v4 }
 0x316   : > { %980 = vset.pattern.permute.xlu1 (!%p881_p8), %v1040_v4 }
 0x381   : > { %v547_v32 = vpop.xlane.xlu1 %546 }
 0x382   : > { %v553_v34 = vadd.f32 %v547_v32, %v537_v31 }
 0x384   : > { %558 = vst.msk [vmem:[#allocation4 + $0x10] sm:$0xff] %vm555_vm4, %v553_v34 }
 0x385   : > { %v541_v37 = vpop.xlane.xlu1 %540 }
 0x386   : > { %v551_v39 = vadd.f32 %v541_v37, %v535_v36  ;;  %v544_v40 = vpop.xlane.xlu0 %543 }
 0x387   : > { %v552_v42 = vadd.f32 %v544_v40, %v536_v38 }
 0x388   : > { %556 = vst.msk [vmem:[#allocation4] sm:$0xff] %vm555_vm4, %v551_v39 }
 0x389   : > { %557 = vst.msk [vmem:[#allocation4 + $0x8] sm:$0xff] %vm555_vm4, %v552_v42 }
 0x38a   : > { %v550_v44 = vpop.xlane.xlu1 %549 }
 0x38b   : > { %v554_v45 = vadd.f32 %v550_v44, %v538_v43  ;;  %v671_v1 = vld [vmem:[#allocation4 + $0x10] sm:$0xff] (!%p881_p8) }
 0x38c   : > { %981 = vrcp.f32 (!%p881_p8), %v671_v1 }
 0x38d   : > { %559 = vst.msk [vmem:[#allocation4 + $0x18] sm:$0xff] %vm555_vm4, %v554_v45 }
 0x38e   : > { %v577_v46 = vpop.permute.xlu1 %576  ;;  %v572_v53 = vpop.permute.xlu0 %571 }
 0x38f   : > { %v586_v51 = vmul.f32 %v577_v46, %v562_v47  ;;  %v585_v59 = vmul.f32 %v572_v53, %v561_v52  ;;  %v669_v2 = vld [vmem:[#allocation4] sm:$0xff] (!%p881_p8) }
 0x390   : > { %v670_v5 = vld [vmem:[#allocation4 + $0x8] sm:$0xff] (!%p881_p8)  ;;  %983 = vrcp.f32 (!%p881_p8), %v669_v2 }
 0x392   : > { %v582_v50 = vpop.permute.xlu1 %581 }
 0x393   : > { %v587_v56 = vmul.f32 %v582_v50, %v563_v49 }
 0x394   : > { %v672_v3 = vld [vmem:[#allocation4 + $0x18] sm:$0xff] (!%p881_p8) }
 0x395   : > { %985 = vrcp.f32 (!%p881_p8), %v672_v3 }
 0x396   : > { %987 = vrcp.f32 (!%p881_p8), %v670_v5  ;;  %v982_v6 = vpop.eup (!%p881_p8), %981 }
 0x397   : > { %689 = vperm.xlu1 (!%p881_p8), %980, %v982_v6  }
 0x39a   : > { %v984_v7 = vpop.eup (!%p881_p8), %983 }
 0x39b   : > { %679 = vperm.xlu0 (!%p881_p8), %979, %v984_v7  }
 0x39f   : > { %v986_v8 = vpop.eup (!%p881_p8), %985 }
 0x3a0   : > { %v988_v9 = vpop.eup (!%p881_p8), %987  ;;  %694 = vperm.xlu1 (!%p881_p8), %980, %v986_v8  }
 0x3a1   : > { %684 = vperm.xlu0 (!%p881_p8), %979, %v988_v9  }
 0x3d1   : > { %v912_v55 = vpop.f32.mrb[0].mxu1  ;;  %664 = sbr.rel (%p881_p8) target bundleno = 1235 (0x4d3), region = 52 }
 0x3d2   : > { %v651_v57 = vadd.f32 %v912_v55, %v586_v51  ;;  %v634_v58 = vpop.f32.mrb[1].mxu1 }
 0x3d3   : > { %v649_v60 = vadd.f32 %v634_v58, %v584_v54  ;;  %v913_v61 = vpop.f32.mrb[2].mxu1  ;;  %v883_v58 = vld [vmem:[%s1186_s5] ss:$0 sm:$0xff] (!%p881_p8) }
 0x3d4   : > { %655 = vst [vmem:[#allocation5 + $0x10] sm:$0xff] %v651_v57  ;;  %v652_v62 = vadd.f32 %v913_v61, %v587_v56  ;;  %v637_v63 = vpop.f32.mrb[3].mxu1  ;;  %v882_v56 = vld [vmem:[%s1185_s4] ss:$0 sm:$0xff] (!%p881_p8) }
 0x3d5   : > { %653 = vst [vmem:[#allocation5] sm:$0xff] %v649_v60  ;;  %v650_v0 = vadd.f32 %v637_v63, %v585_v59 }
 0x3d6   : > { %656 = vst [vmem:[#allocation5 + $0x18] sm:$0xff] %v652_v62 }
 0x3d7   : > { %654 = vst [vmem:[#allocation5 + $0x8] sm:$0xff] %v650_v0 }
 0x3db   : > { %v667_v12 = vld [vmem:[#allocation5 + $0x10] sm:$0xff] }
 0x3dc   : > { %v665_v10 = vld [vmem:[#allocation5] sm:$0xff] }
 0x3dd   : > { %v668_v20 = vld [vmem:[#allocation5 + $0x18] sm:$0xff] }
 0x3de   : > { %v666_v15 = vld [vmem:[#allocation5 + $0x8] sm:$0xff] }
 0x416   : > { %v690_v11 = vpop.permute.xlu1 %689 }
 0x417   : > { %v699_v16 = vmul.f32 %v690_v11, %v667_v12 }
 0x419   : > { %v715_v23 = vmul.f32 %v699_v16, %v699_v16 }
 0x41a   : > { %v680_v13 = vpop.permute.xlu0 %679 }
 0x41b   : > { %v697_v14 = vmul.f32 %v680_v13, %v665_v10 }
 0x41d   : > { %701 = vadd.xlane.f32.xlu0 %v697_v14  ;;  %v713_v22 = vmul.f32 %v697_v14, %v697_v14 }
 0x41f   : > { %v695_v19 = vpop.permute.xlu1 %694 }
 0x420   : > { %v685_v17 = vpop.permute.xlu0 %684  ;;  %v700_v21 = vmul.f32 %v695_v19, %v668_v20 }
 0x421   : > { %v698_v18 = vmul.f32 %v685_v17, %v666_v15  ;;  %705 = vadd.xlane.f32.xlu0 %v699_v16 }
 0x422   : > { %v716_v25 = vmul.f32 %v700_v21, %v700_v21 }
 0x423   : > { %703 = vadd.xlane.f32.xlu1 %v698_v18  ;;  %v714_v24 = vmul.f32 %v698_v18, %v698_v18 }
 0x425   : > { %717 = vadd.xlane.f32.xlu0 %v713_v22 }
 0x427   : > { %707 = vadd.xlane.f32.xlu1 %v700_v21 }
 0x429   : > { %719 = vadd.xlane.f32.xlu0 %v714_v24 }
 0x42b   : > { %721 = vadd.xlane.f32.xlu1 %v715_v23 }
 0x42d   : > { %723 = vadd.xlane.f32.xlu0 %v716_v25 }
 0x4aa   : > { %v702_v26 = vpop.xlane.xlu0 %701 }
 0x4ab   : > { %v709_v29 = vmul.f32 0.03125, %v702_v26 }
 0x4ad   : > { %v729_v34 = vmul.f32 %v709_v29, %v709_v29  ;;  %v745_v54 = vsub.f32 %v697_v14, %v709_v29 }
 0x4ae   : > { %v706_v28 = vpop.xlane.xlu0 %705 }
 0x4af   : > { %v711_v31 = vmul.f32 0.03125, %v706_v28 }
 0x4b0   : > { %v704_v27 = vpop.xlane.xlu1 %703 }
 0x4b1   : > { %v710_v30 = vmul.f32 0.03125, %v704_v27  ;;  %v731_v38 = vmul.f32 %v711_v31, %v711_v31  ;;  %v747_v59 = vsub.f32 %v699_v16, %v711_v31 }
 0x4b2   : > { %v718_v33 = vpop.xlane.xlu0 %717 }
 0x4b3   : > { %v725_v35 = vmul.f32 0.03125, %v718_v33  ;;  %v730_v37 = vmul.f32 %v710_v30, %v710_v30  ;;  %v746_v62 = vsub.f32 %v698_v18, %v710_v30 }
 0x4b4   : > { %v708_v32 = vpop.xlane.xlu1 %707 }
 0x4b5   : > { %v733_v36 = vsub.f32 %v725_v35, %v729_v34  ;;  %v712_v41 = vmul.f32 0.03125, %v708_v32 }
 0x4b6   : > { %v720_v40 = vpop.xlane.xlu0 %719 }
 0x4b7   : > { %v737_v42 = vadd.f32 1e-05, %v733_v36  ;;  %v726_v44 = vmul.f32 0.03125, %v720_v40  ;;  %v732_v48 = vmul.f32 %v712_v41, %v712_v41  ;;  %v748_v3 = vsub.f32 %v700_v21, %v712_v41 }
 0x4b8   : > { %v722_v39 = vpop.xlane.xlu1 %721 }
 0x4b9   : > { %v727_v43 = vmul.f32 0.03125, %v722_v39  ;;  %989 = vrsqrt.f32 %v737_v42  ;;  %v734_v46 = vsub.f32 %v726_v44, %v730_v37 }
 0x4ba   : > { %v724_v47 = vpop.xlane.xlu0 %723 }
 0x4bb   : > { %v735_v45 = vsub.f32 %v727_v43, %v731_v38  ;;  %v738_v50 = vadd.f32 1e-05, %v734_v46  ;;  %v728_v51 = vmul.f32 0.03125, %v724_v47 }
 0x4bd   : > { %v739_v49 = vadd.f32 1e-05, %v735_v45  ;;  %v736_v52 = vsub.f32 %v728_v51, %v732_v48 }
 0x4bf   : > { %991 = vrsqrt.f32 %v739_v49  ;;  %v740_v53 = vadd.f32 1e-05, %v736_v52 }
 0x4c0   : > { %993 = vrsqrt.f32 %v738_v50 }
 0x4c1   : > { %995 = vrsqrt.f32 %v740_v53 }
 0x4c3   : > { %v990_v55 = vpop.eup %989 }
 0x4c4   : > { %v749_v57 = vmul.f32 %v990_v55, %v745_v54 }
 0x4c6   : > { %v760_v60 = vmul.f32 %v882_v56, %v749_v57 }
 0x4c8   : > { %v771_v0 = vadd.f32 %v883_v58, %v760_v60 }
 0x4c9   : > { %v992_v61 = vpop.eup %991 }
 0x4ca   : > { %v994_v63 = vpop.eup %993  ;;  %v751_v1 = vmul.f32 %v992_v61, %v747_v59  ;;  %775 = vst [vmem:[%s1120_s16] sm:$0xff] %v771_v0 }
 0x4cb   : > { %v750_v2 = vmul.f32 %v994_v63, %v746_v62  ;;  %v996_v5 = vpop.eup %995 }
 0x4cc   : > { %v762_v4 = vmul.f32 %v882_v56, %v751_v1  ;;  %v752_v8 = vmul.f32 %v996_v5, %v748_v3 }
 0x4cd   : > { %v761_v6 = vmul.f32 %v882_v56, %v750_v2 }
 0x4ce   : > { %v773_v7 = vadd.f32 %v883_v58, %v762_v4  ;;  %v763_v10 = vmul.f32 %v882_v56, %v752_v8 }
 0x4cf   : > { %v772_v9 = vadd.f32 %v883_v58, %v761_v6 }
 0x4d0   : > { %777 = vst [vmem:[%s1120_s16 + $0x10] sm:$0xff] %v773_v7  ;;  %v774_v11 = vadd.f32 %v883_v58, %v763_v10 }
 0x4d1   : > { %776 = vst [vmem:[%s1120_s16 + $0x8] sm:$0xff] %v772_v9 }
 0x4d2   : > { %778 = vst [vmem:[%s1120_s16 + $0x18] sm:$0xff] %v774_v11 }
 0x4d3 PF: > { %s16_s25 = sadd.s32 1, %s1035_s25   ;;  %s1188_s21 = smov %s1027_s23 }
 0x4d4   : > { %p13_p9 = scmp.ge.s32.totalorder %s16_s25, 6   ;;  %s1189_s22 = smov %s1031_s24 }
 0x4d5   : > { %s1190_s23 = smov %s1193_s26  ;;  %s1191_s24 = smov %s1197_s27 }
 0x4d6   :  { %15 = sbr.rel (!%p13_p9) target bundleno = 3 (0x3), region = 85 }

</bundles_post_ra>
